<compile_context>
chip_gen: v7x
topology: tpu7x:2x2x1
jax: 0.10.0
libtpu: 0.0.40
codegen_flags: <defaults>
</compile_context>

<pallas_src>
import functools

import jax
import jax.numpy as jnp
from jax import lax
from jax.experimental import pallas as pl
from jax.experimental.pallas import tpu as pltpu


_CONTRACT_LAST = (((1,), (1,)), ((), ()))   # dot_general: contract dim 1 of both operands


def _recip(x):
    """1/x: EUP approximate seed + one Newton step (keeps the divide off the VALU)."""
    r = pl.reciprocal(x, approx=True)
    return r * (2.0 - x * r)


def _attention_kernel(dec_ref, encp_ref, encn_ref, ctxp_ref, ctxn_ref,
                      m1_ref, m2_ref, gp_ref, gn_ref,
                      wp_ref, wn_ref, wd_ref, b_ref,
                      out_ref, pa1_ref, na1_ref, pa2_ref, na2_ref,
                      *, batch_block):
    wp = wp_ref[...]          # (H, H)  linear_out weight slab hitting pos_comb
    wn = wn_ref[...]          # (H, H)  ... hitting neg_comb
    wd = wd_ref[...]          # (H, H)  ... hitting dec_hidden
    bias = b_ref[...]         # (1, H)
    gp = gp_ref[...]          # (Lp, Sp) segment indicator: G[l, s] = 1 iff l // Tk == s
    gn = gn_ref[...]          # (Ln, Sn)

    def branch(dh, enc, ctx, mask_add, g):
        # ---- second attention: softmax over the set dimension ----
        l2 = lax.dot_general(dh, ctx, _CONTRACT_LAST,
                             preferred_element_type=jnp.float32)          # (Tq, S)
        p2 = jnp.exp(l2 - jnp.max(l2, axis=-1, keepdims=True))
        attn2 = p2 * _recip(jnp.sum(p2, axis=-1, keepdims=True))          # (Tq, S)

        # ---- first attention, fused over all S*Tk keys (one MXU dot) ----
        l1 = lax.dot_general(dh, enc, _CONTRACT_LAST,
                             preferred_element_type=jnp.float32)          # (Tq, L)
        l1 = l1 + mask_add                                                # additive -1e30 mask
        # One row-max per branch (softmax is shift-invariant within each Tk segment;
        # only a numerical concern if segment maxima differ by > ~88).
        p1 = jnp.exp(l1 - jnp.max(l1, axis=-1, keepdims=True))            # (Tq, L)
        seg_sum = jnp.dot(p1, g, preferred_element_type=jnp.float32)      # (Tq, S)
        inv_b = lax.dot_general(_recip(seg_sum), g, _CONTRACT_LAST,
                                preferred_element_type=jnp.float32)       # (Tq, L)
        attn1 = p1 * inv_b                                                # per-segment softmax
        # scale probabilities by attn2 (broadcast per segment), combine in ONE dot
        attn2_b = lax.dot_general(attn2, g, _CONTRACT_LAST,
                                  preferred_element_type=jnp.float32)     # (Tq, L)
        comb = jnp.dot(attn1 * attn2_b, enc,
                       preferred_element_type=jnp.float32)                # (Tq, H)
        return attn1, attn2, comb

    for bb in range(batch_block):                      # static, small unroll
        dh = dec_ref[bb]                                                  # (Tq, H)
        a1p, a2p, comb_p = branch(dh, encp_ref[bb], ctxp_ref[bb], m1_ref[bb], gp)
        a1n, a2n, comb_n = branch(dh, encn_ref[bb], ctxn_ref[bb], m2_ref[bb], gn)

        # one lane-dense store per attention map
        pa1_ref[bb] = a1p.astype(pa1_ref.dtype)
        na1_ref[bb] = a1n.astype(na1_ref.dtype)
        pa2_ref[bb] = a2p.astype(pa2_ref.dtype)
        na2_ref[bb] = a2n.astype(na2_ref.dtype)

        # linear_out without the lane concat: three accumulating (H,H) dots
        pre = (lax.dot_general(comb_p, wp, _CONTRACT_LAST,
                               preferred_element_type=jnp.float32)
               + lax.dot_general(comb_n, wn, _CONTRACT_LAST,
                                 preferred_element_type=jnp.float32)
               + lax.dot_general(dh, wd, _CONTRACT_LAST,
                                 preferred_element_type=jnp.float32)
               + bias)
        out_ref[bb] = jnp.tanh(pre).astype(out_ref.dtype)


def attention_forward(dec_hidden, context, masks, w, b, *, batch_block=None):
    """Mirrors Attention.forward with attn_mode=True.

    Returns (output, ((pos_attn1, neg_attn1), (pos_attn2, neg_attn2)))."""
    (pos_enc, neg_enc), (ctx_p, ctx_n) = context
    mask1, mask2 = masks

    f32 = jnp.float32
    dec_hidden = jnp.asarray(dec_hidden, f32)
    pos_enc = jnp.asarray(pos_enc, f32)
    neg_enc = jnp.asarray(neg_enc, f32)
    ctx_p = jnp.asarray(ctx_p, f32)
    ctx_n = jnp.asarray(ctx_n, f32)

    B, Tq, H = dec_hidden.shape
    Sp, Tkp = pos_enc.shape[1], pos_enc.shape[2]
    Sn, Tkn = neg_enc.shape[1], neg_enc.shape[2]
    Lp, Ln = Sp * Tkp, Sn * Tkn

    # self.mask1 = self.mask1[:, :, :context[0][0].size(2)] (and mask2 alike)
    mask1 = mask1[:, :, :Tkp]
    mask2 = mask2[:, :, :Tkn]

    # additive float masks (-1e30 where masked), lane-flattened over (S, Tk)
    m1_add = jnp.where(mask1.astype(bool), f32(-1e30), f32(0.0)).reshape(B, 1, Lp)
    m2_add = jnp.where(mask2.astype(bool), f32(-1e30), f32(0.0)).reshape(B, 1, Ln)

    # encoder slabs flattened to (B, S*Tk, H) so the kernel does a single dot / branch
    enc_p = pos_enc.reshape(B, Lp, H)
    enc_n = neg_enc.reshape(B, Ln, H)

    # segment-indicator matrices: G[l, s] = 1 iff key l belongs to set s
    def seg_indicator(S, Tk):
        l = jnp.arange(S * Tk, dtype=jnp.int32)
        s = jnp.arange(S, dtype=jnp.int32)
        return (l[:, None] // Tk == s[None, :]).astype(f32)
    Gp = seg_indicator(Sp, Tkp)
    Gn = seg_indicator(Sn, Tkn)

    # linear_out (PyTorch layout: weight (H, 3H), bias (H,)) — no transpose; split
    # into the three (H, H) slabs consumed by the kernel's accumulating dots.
    w = jnp.asarray(w, f32)
    Wp, Wn, Wd = w[:, :H], w[:, H:2 * H], w[:, 2 * H:3 * H]
    bias = jnp.asarray(b, f32).reshape(1, H)

    # batch blocking: amortize per-step overhead, keep >= 2 grid steps (v7x: 2 TCs)
    if batch_block is None:
        if B <= 1:
            batch_block = 1
        else:
            batch_block = 1
            for cand in range(min(B // 2, 8), 0, -1):
                if B % cand == 0:
                    batch_block = cand
                    break
    assert B % batch_block == 0, "batch_block must divide the batch size"
    BB = batch_block
    num_blocks = B // BB

    bmap3 = lambda i: (i, 0, 0)
    const2 = lambda i: (0, 0)

    in_specs = [
        pl.BlockSpec((BB, Tq, H), bmap3),       # dec_hidden
        pl.BlockSpec((BB, Lp, H), bmap3),       # pos_enc (flattened)
        pl.BlockSpec((BB, Ln, H), bmap3),       # neg_enc (flattened)
        pl.BlockSpec((BB, Sp, H), bmap3),       # ctx_p
        pl.BlockSpec((BB, Sn, H), bmap3),       # ctx_n
        pl.BlockSpec((BB, 1, Lp), bmap3),       # additive mask1
        pl.BlockSpec((BB, 1, Ln), bmap3),       # additive mask2
        pl.BlockSpec((Lp, Sp), const2),         # Gp
        pl.BlockSpec((Ln, Sn), const2),         # Gn
        pl.BlockSpec((H, H), const2),           # Wp
        pl.BlockSpec((H, H), const2),           # Wn
        pl.BlockSpec((H, H), const2),           # Wd
        pl.BlockSpec((1, H), const2),           # bias
    ]
    out_specs = [
        pl.BlockSpec((BB, Tq, H), bmap3),       # output
        pl.BlockSpec((BB, Tq, Lp), bmap3),      # pos_attn1 (lane-flattened)
        pl.BlockSpec((BB, Tq, Ln), bmap3),      # neg_attn1 (lane-flattened)
        pl.BlockSpec((BB, Tq, Sp), bmap3),      # pos_attn2
        pl.BlockSpec((BB, Tq, Sn), bmap3),      # neg_attn2
    ]
    out_shapes = (
        jax.ShapeDtypeStruct((B, Tq, H), dec_hidden.dtype),
        jax.ShapeDtypeStruct((B, Tq, Lp), f32),
        jax.ShapeDtypeStruct((B, Tq, Ln), f32),
        jax.ShapeDtypeStruct((B, Tq, Sp), f32),
        jax.ShapeDtypeStruct((B, Tq, Sn), f32),
    )

    kernel = functools.partial(_attention_kernel, batch_block=BB)
    out, pa1f, na1f, pa2, na2 = pl.pallas_call(
        kernel,
        out_shape=out_shapes,
        grid_spec=pltpu.PrefetchScalarGridSpec(
            num_scalar_prefetch=0,
            grid=(num_blocks,),
            in_specs=in_specs,
            out_specs=out_specs,
        ),
        compiler_params=pltpu.CompilerParams(
            dimension_semantics=("parallel",)),
    )(dec_hidden, enc_p, enc_n, ctx_p, ctx_n, m1_add, m2_add,
      Gp, Gn, Wp, Wn, Wd, bias)

    # back to PyTorch's (B, Tq, S, Tk) layout for the attn1 maps (glue only)
    pos_attn1 = pa1f.reshape(B, Tq, Sp, Tkp)
    neg_attn1 = na1f.reshape(B, Tq, Sn, Tkn)
    return out, ((pos_attn1, neg_attn1), (pa2, na2))


def attention_reference(dec_hidden, context, masks, w, b):
    """Pure-JAX replica of the PyTorch forward (attn_mode=True) for checking."""
    (pos_enc, neg_enc), (ctx_p, ctx_n) = context
    mask1, mask2 = masks
    mask1 = mask1[:, :, :pos_enc.shape[2]]
    mask2 = mask2[:, :, :neg_enc.shape[2]]

    def first(dh, enc, mask):
        scores = jnp.einsum('bqd,bskd->bqsk', dh, enc)
        scores = jnp.where(mask[:, None].astype(bool), -jnp.inf, scores)
        attn = jax.nn.softmax(scores, axis=-1)
        c_t = jnp.einsum('bqsk,bskd->bqsd', attn, enc)
        return c_t, attn

    def second(dh, ctx):
        return jax.nn.softmax(jnp.einsum('bqd,bsd->bqs', dh, ctx), axis=-1)

    pos_c_t, pa1 = first(dec_hidden, pos_enc, mask1)
    neg_c_t, na1 = first(dec_hidden, neg_enc, mask2)
    pa2 = second(dec_hidden, ctx_p)
    na2 = second(dec_hidden, ctx_n)
    pos_comb = jnp.einsum('bqs,bqsd->bqd', pa2, pos_c_t)
    neg_comb = jnp.einsum('bqs,bqsd->bqd', na2, neg_c_t)
    combined = jnp.concatenate([pos_comb, neg_comb, dec_hidden], axis=-1)
    out = jnp.tanh(combined @ w.T + b)
    return out, ((pa1, na1), (pa2, na2))


if __name__ == "__main__":
    B, Tq, H = 2, 4, 32     # batch, dec_len, hidden (dim)
    S, Tk = 3, 8            # set_size, enc_len

    key = jax.random.PRNGKey(0)
    k = jax.random.split(key, 8)

    dec_hidden = jax.random.normal(k[0], (B, Tq, H), jnp.float32)
    pos_enc = jax.random.normal(k[1], (B, S, Tk, H), jnp.float32)
    neg_enc = jax.random.normal(k[2], (B, S, Tk, H), jnp.float32)
    ctx_p = jax.random.normal(k[3], (B, S, H), jnp.float32)
    ctx_n = jax.random.normal(k[4], (B, S, H), jnp.float32)

    # deterministic length-style masks (1 = masked); never a fully-masked row
    lens1 = jnp.array([[8, 6, 5], [7, 8, 4]], jnp.int32)          # (B, S)
    lens2 = jnp.array([[5, 8, 7], [8, 3, 6]], jnp.int32)
    pos_idx = jnp.arange(Tk, dtype=jnp.int32)[None, None, :]
    mask1 = (pos_idx >= lens1[:, :, None]).astype(jnp.int32)      # (B, S, Tk)
    mask2 = (pos_idx >= lens2[:, :, None]).astype(jnp.int32)

    # linear_out = nn.Linear(dim * 3, dim): weight (H, 3H), bias (H,)
    w = 0.1 * jax.random.normal(k[5], (H, 3 * H), jnp.float32)
    bias = 0.1 * jax.random.normal(k[6], (H,), jnp.float32)

    context = ((pos_enc, neg_enc), (ctx_p, ctx_n))
    masks = (mask1, mask2)

    out, ((pa1, na1), (pa2, na2)) = attention_forward(
        dec_hidden, context, masks, w, bias)
    jax.block_until_ready(out)

    # verify against pure-JAX reference of the PyTorch semantics
    ref_out, ((rpa1, rna1), (rpa2, rna2)) = attention_reference(
        dec_hidden, context, masks, w, bias)

    assert out.shape == (B, Tq, H)
    assert pa1.shape == (B, Tq, S, Tk) and na1.shape == (B, Tq, S, Tk)
    assert pa2.shape == (B, Tq, S) and na2.shape == (B, Tq, S)
    # slightly relaxed vs 1e-5: EUP reciprocal seed + Newton step and matmul-based
    # segment sums reorder a few f32 roundings relative to the XLA reference.
    for a, r in ((out, ref_out), (pa1, rpa1), (na1, rna1), (pa2, rpa2), (na2, rna2)):
        assert jnp.allclose(a, r, rtol=5e-4, atol=5e-5), "mismatch vs reference"

    print("KERNEL_OK")
</pallas_src>

<mosaic_0001>
module attributes {stable_mosaic.version = 11 : i64} {
  func.func @_attention_kernel(%arg0: i32, %arg1: memref<1x4x32xf32, #tpu.memory_space<vmem>>, %arg2: memref<1x24x32xf32, #tpu.memory_space<vmem>>, %arg3: memref<1x24x32xf32, #tpu.memory_space<vmem>>, %arg4: memref<1x3x32xf32, #tpu.memory_space<vmem>>, %arg5: memref<1x3x32xf32, #tpu.memory_space<vmem>>, %arg6: memref<1x1x24xf32, #tpu.memory_space<vmem>>, %arg7: memref<1x1x24xf32, #tpu.memory_space<vmem>>, %arg8: memref<24x3xf32, #tpu.memory_space<vmem>>, %arg9: memref<24x3xf32, #tpu.memory_space<vmem>>, %arg10: memref<32x32xf32, #tpu.memory_space<vmem>>, %arg11: memref<32x32xf32, #tpu.memory_space<vmem>>, %arg12: memref<32x32xf32, #tpu.memory_space<vmem>>, %arg13: memref<1x32xf32, #tpu.memory_space<vmem>>, %arg14: memref<1x4x32xf32, #tpu.memory_space<vmem>>, %arg15: memref<1x4x24xf32, #tpu.memory_space<vmem>>, %arg16: memref<1x4x24xf32, #tpu.memory_space<vmem>>, %arg17: memref<1x4x3xf32, #tpu.memory_space<vmem>>, %arg18: memref<1x4x3xf32, #tpu.memory_space<vmem>>) attributes {dimension_semantics = [#tpu.dimension_semantics<parallel>], iteration_bounds = array<i64: 2>, scalar_prefetch = 0 : i64, scratch_operands = 0 : i64, tpu.core_type = #tpu.core_type<tc>, window_params = [{transform_indices = @transform_0, window_bounds = array<i64: 1, 4, 32>}, {transform_indices = @transform_1, window_bounds = array<i64: 1, 24, 32>}, {transform_indices = @transform_2, window_bounds = array<i64: 1, 24, 32>}, {transform_indices = @transform_3, window_bounds = array<i64: 1, 3, 32>}, {transform_indices = @transform_4, window_bounds = array<i64: 1, 3, 32>}, {transform_indices = @transform_5, window_bounds = array<i64: 1, 1, 24>}, {transform_indices = @transform_6, window_bounds = array<i64: 1, 1, 24>}, {pipeline_mode = #tpu.pipeline_mode<synchronous>, transform_indices = @transform_7, window_bounds = array<i64: 24, 3>}, {pipeline_mode = #tpu.pipeline_mode<synchronous>, transform_indices = @transform_8, window_bounds = array<i64: 24, 3>}, {pipeline_mode = #tpu.pipeline_mode<synchronous>, transform_indices = @transform_9, window_bounds = array<i64: 32, 32>}, {pipeline_mode = #tpu.pipeline_mode<synchronous>, transform_indices = @transform_10, window_bounds = array<i64: 32, 32>}, {pipeline_mode = #tpu.pipeline_mode<synchronous>, transform_indices = @transform_11, window_bounds = array<i64: 32, 32>}, {pipeline_mode = #tpu.pipeline_mode<synchronous>, transform_indices = @transform_12, window_bounds = array<i64: 1, 32>}, {transform_indices = @transform_13, window_bounds = array<i64: 1, 4, 32>}, {transform_indices = @transform_14, window_bounds = array<i64: 1, 4, 24>}, {transform_indices = @transform_15, window_bounds = array<i64: 1, 4, 24>}, {transform_indices = @transform_16, window_bounds = array<i64: 1, 4, 3>}, {transform_indices = @transform_17, window_bounds = array<i64: 1, 4, 3>}]} {
    %c0 = arith.constant 0 : index
    %c0_0 = arith.constant 0 : index
    %0 = vector.load %arg10[%c0, %c0_0] : memref<32x32xf32, #tpu.memory_space<vmem>>, vector<32x32xf32>
    %c0_1 = arith.constant 0 : index
    %c0_2 = arith.constant 0 : index
    %1 = vector.load %arg11[%c0_1, %c0_2] : memref<32x32xf32, #tpu.memory_space<vmem>>, vector<32x32xf32>
    %c0_3 = arith.constant 0 : index
    %c0_4 = arith.constant 0 : index
    %2 = vector.load %arg12[%c0_3, %c0_4] : memref<32x32xf32, #tpu.memory_space<vmem>>, vector<32x32xf32>
    %c0_5 = arith.constant 0 : index
    %c0_6 = arith.constant 0 : index
    %3 = vector.load %arg13[%c0_5, %c0_6] : memref<1x32xf32, #tpu.memory_space<vmem>>, vector<1x32xf32>
    %c0_7 = arith.constant 0 : index
    %c0_8 = arith.constant 0 : index
    %4 = vector.load %arg8[%c0_7, %c0_8] : memref<24x3xf32, #tpu.memory_space<vmem>>, vector<24x3xf32>
    %c0_9 = arith.constant 0 : index
    %c0_10 = arith.constant 0 : index
    %5 = vector.load %arg9[%c0_9, %c0_10] : memref<24x3xf32, #tpu.memory_space<vmem>>, vector<24x3xf32>
    %c0_11 = arith.constant 0 : index
    %c0_12 = arith.constant 0 : index
    %c0_13 = arith.constant 0 : index
    %6 = vector.load %arg1[%c0_11, %c0_12, %c0_13] : memref<1x4x32xf32, #tpu.memory_space<vmem>>, vector<1x4x32xf32>
    %7 = vector.shape_cast %6 : vector<1x4x32xf32> to vector<4x32xf32>
    %c0_14 = arith.constant 0 : index
    %c0_15 = arith.constant 0 : index
    %c0_16 = arith.constant 0 : index
    %8 = vector.load %arg2[%c0_14, %c0_15, %c0_16] : memref<1x24x32xf32, #tpu.memory_space<vmem>>, vector<1x24x32xf32>
    %9 = vector.shape_cast %8 : vector<1x24x32xf32> to vector<24x32xf32>
    %c0_17 = arith.constant 0 : index
    %c0_18 = arith.constant 0 : index
    %c0_19 = arith.constant 0 : index
    %10 = vector.load %arg4[%c0_17, %c0_18, %c0_19] : memref<1x3x32xf32, #tpu.memory_space<vmem>>, vector<1x3x32xf32>
    %11 = vector.shape_cast %10 : vector<1x3x32xf32> to vector<3x32xf32>
    %c0_20 = arith.constant 0 : index
    %c0_21 = arith.constant 0 : index
    %c0_22 = arith.constant 0 : index
    %12 = vector.load %arg6[%c0_20, %c0_21, %c0_22] : memref<1x1x24xf32, #tpu.memory_space<vmem>>, vector<1x1x24xf32>
    %13 = vector.shape_cast %12 : vector<1x1x24xf32> to vector<1x24xf32>
    %cst = arith.constant dense<0.000000e+00> : vector<4x3xf32>
    %14 = tpu.matmul %7, %11, %cst {dimension_numbers = #tpu.dot_dimension_numbers<[1], [1], [0], [0], [0, 0, 1, 0], [], []>} : vector<4x32xf32>, vector<3x32xf32>, vector<4x3xf32> -> vector<4x3xf32>
    %cst_23 = arith.constant dense<0xFF800000> : vector<4xf32>
    %15 = vector.multi_reduction <maximumf>, %14, %cst_23 [1] : vector<4x3xf32> to vector<4xf32>
    %16 = vector.shape_cast %15 : vector<4xf32> to vector<4x1xf32>
    %17 = vector.broadcast %16 : vector<4x1xf32> to vector<4x3xf32>
    %18 = arith.subf %14, %17 : vector<4x3xf32>
    %19 = math.exp %18 : vector<4x3xf32>
    %cst_24 = arith.constant dense<0.000000e+00> : vector<4xf32>
    %20 = vector.multi_reduction <add>, %19, %cst_24 [1] : vector<4x3xf32> to vector<4xf32>
    %21 = vector.shape_cast %20 : vector<4xf32> to vector<4x1xf32>
    %22 = tpu.reciprocal %21 {approx = true} : vector<4x1xf32> -> vector<4x1xf32>
    %23 = arith.mulf %21, %22 : vector<4x1xf32>
    %cst_25 = arith.constant 2.000000e+00 : f32
    %24 = vector.broadcast %cst_25 : f32 to vector<4x1xf32>
    %25 = arith.subf %24, %23 : vector<4x1xf32>
    %26 = arith.mulf %22, %25 : vector<4x1xf32>
    %27 = vector.broadcast %26 : vector<4x1xf32> to vector<4x3xf32>
    %28 = arith.mulf %19, %27 : vector<4x3xf32>
    %cst_26 = arith.constant dense<0.000000e+00> : vector<4x24xf32>
    %29 = tpu.matmul %7, %9, %cst_26 {dimension_numbers = #tpu.dot_dimension_numbers<[1], [1], [0], [0], [0, 0, 1, 0], [], []>} : vector<4x32xf32>, vector<24x32xf32>, vector<4x24xf32> -> vector<4x24xf32>
    %30 = vector.broadcast %13 : vector<1x24xf32> to vector<4x24xf32>
    %31 = arith.addf %29, %30 : vector<4x24xf32>
    %cst_27 = arith.constant dense<0xFF800000> : vector<4xf32>
    %32 = vector.multi_reduction <maximumf>, %31, %cst_27 [1] : vector<4x24xf32> to vector<4xf32>
    %33 = vector.shape_cast %32 : vector<4xf32> to vector<4x1xf32>
    %34 = vector.broadcast %33 : vector<4x1xf32> to vector<4x24xf32>
    %35 = arith.subf %31, %34 : vector<4x24xf32>
    %36 = math.exp %35 : vector<4x24xf32>
    %cst_28 = arith.constant dense<0.000000e+00> : vector<4x3xf32>
    %37 = tpu.matmul %36, %4, %cst_28 {dimension_numbers = #tpu.dot_dimension_numbers<[1], [0], [0], [1], [0, 0, 1, 1], [], []>} : vector<4x24xf32>, vector<24x3xf32>, vector<4x3xf32> -> vector<4x3xf32>
    %38 = tpu.reciprocal %37 {approx = true} : vector<4x3xf32> -> vector<4x3xf32>
    %39 = arith.mulf %37, %38 : vector<4x3xf32>
    %cst_29 = arith.constant 2.000000e+00 : f32
    %40 = vector.broadcast %cst_29 : f32 to vector<4x3xf32>
    %41 = arith.subf %40, %39 : vector<4x3xf32>
    %42 = arith.mulf %38, %41 : vector<4x3xf32>
    %cst_30 = arith.constant dense<0.000000e+00> : vector<4x24xf32>
    %43 = tpu.matmul %42, %4, %cst_30 {dimension_numbers = #tpu.dot_dimension_numbers<[1], [1], [0], [0], [0, 0, 1, 0], [], []>} : vector<4x3xf32>, vector<24x3xf32>, vector<4x24xf32> -> vector<4x24xf32>
    %44 = arith.mulf %36, %43 : vector<4x24xf32>
    %cst_31 = arith.constant dense<0.000000e+00> : vector<4x24xf32>
    %45 = tpu.matmul %28, %4, %cst_31 {dimension_numbers = #tpu.dot_dimension_numbers<[1], [1], [0], [0], [0, 0, 1, 0], [], []>} : vector<4x3xf32>, vector<24x3xf32>, vector<4x24xf32> -> vector<4x24xf32>
    %46 = arith.mulf %44, %45 : vector<4x24xf32>
    %cst_32 = arith.constant dense<0.000000e+00> : vector<4x32xf32>
    %47 = tpu.matmul %46, %9, %cst_32 {dimension_numbers = #tpu.dot_dimension_numbers<[1], [0], [0], [1], [0, 0, 1, 1], [], []>} : vector<4x24xf32>, vector<24x32xf32>, vector<4x32xf32> -> vector<4x32xf32>
    %c0_33 = arith.constant 0 : index
    %c0_34 = arith.constant 0 : index
    %c0_35 = arith.constant 0 : index
    %48 = vector.load %arg3[%c0_33, %c0_34, %c0_35] : memref<1x24x32xf32, #tpu.memory_space<vmem>>, vector<1x24x32xf32>
    %49 = vector.shape_cast %48 : vector<1x24x32xf32> to vector<24x32xf32>
    %c0_36 = arith.constant 0 : index
    %c0_37 = arith.constant 0 : index
    %c0_38 = arith.constant 0 : index
    %50 = vector.load %arg5[%c0_36, %c0_37, %c0_38] : memref<1x3x32xf32, #tpu.memory_space<vmem>>, vector<1x3x32xf32>
    %51 = vector.shape_cast %50 : vector<1x3x32xf32> to vector<3x32xf32>
    %c0_39 = arith.constant 0 : index
    %c0_40 = arith.constant 0 : index
    %c0_41 = arith.constant 0 : index
    %52 = vector.load %arg7[%c0_39, %c0_40, %c0_41] : memref<1x1x24xf32, #tpu.memory_space<vmem>>, vector<1x1x24xf32>
    %53 = vector.shape_cast %52 : vector<1x1x24xf32> to vector<1x24xf32>
    %cst_42 = arith.constant dense<0.000000e+00> : vector<4x3xf32>
    %54 = tpu.matmul %7, %51, %cst_42 {dimension_numbers = #tpu.dot_dimension_numbers<[1], [1], [0], [0], [0, 0, 1, 0], [], []>} : vector<4x32xf32>, vector<3x32xf32>, vector<4x3xf32> -> vector<4x3xf32>
    %cst_43 = arith.constant dense<0xFF800000> : vector<4xf32>
    %55 = vector.multi_reduction <maximumf>, %54, %cst_43 [1] : vector<4x3xf32> to vector<4xf32>
    %56 = vector.shape_cast %55 : vector<4xf32> to vector<4x1xf32>
    %57 = vector.broadcast %56 : vector<4x1xf32> to vector<4x3xf32>
    %58 = arith.subf %54, %57 : vector<4x3xf32>
    %59 = math.exp %58 : vector<4x3xf32>
    %cst_44 = arith.constant dense<0.000000e+00> : vector<4xf32>
    %60 = vector.multi_reduction <add>, %59, %cst_44 [1] : vector<4x3xf32> to vector<4xf32>
    %61 = vector.shape_cast %60 : vector<4xf32> to vector<4x1xf32>
    %62 = tpu.reciprocal %61 {approx = true} : vector<4x1xf32> -> vector<4x1xf32>
    %63 = arith.mulf %61, %62 : vector<4x1xf32>
    %cst_45 = arith.constant 2.000000e+00 : f32
    %64 = vector.broadcast %cst_45 : f32 to vector<4x1xf32>
    %65 = arith.subf %64, %63 : vector<4x1xf32>
    %66 = arith.mulf %62, %65 : vector<4x1xf32>
    %67 = vector.broadcast %66 : vector<4x1xf32> to vector<4x3xf32>
    %68 = arith.mulf %59, %67 : vector<4x3xf32>
    %cst_46 = arith.constant dense<0.000000e+00> : vector<4x24xf32>
    %69 = tpu.matmul %7, %49, %cst_46 {dimension_numbers = #tpu.dot_dimension_numbers<[1], [1], [0], [0], [0, 0, 1, 0], [], []>} : vector<4x32xf32>, vector<24x32xf32>, vector<4x24xf32> -> vector<4x24xf32>
    %70 = vector.broadcast %53 : vector<1x24xf32> to vector<4x24xf32>
    %71 = arith.addf %69, %70 : vector<4x24xf32>
    %cst_47 = arith.constant dense<0xFF800000> : vector<4xf32>
    %72 = vector.multi_reduction <maximumf>, %71, %cst_47 [1] : vector<4x24xf32> to vector<4xf32>
    %73 = vector.shape_cast %72 : vector<4xf32> to vector<4x1xf32>
    %74 = vector.broadcast %73 : vector<4x1xf32> to vector<4x24xf32>
    %75 = arith.subf %71, %74 : vector<4x24xf32>
    %76 = math.exp %75 : vector<4x24xf32>
    %cst_48 = arith.constant dense<0.000000e+00> : vector<4x3xf32>
    %77 = tpu.matmul %76, %5, %cst_48 {dimension_numbers = #tpu.dot_dimension_numbers<[1], [0], [0], [1], [0, 0, 1, 1], [], []>} : vector<4x24xf32>, vector<24x3xf32>, vector<4x3xf32> -> vector<4x3xf32>
    %78 = tpu.reciprocal %77 {approx = true} : vector<4x3xf32> -> vector<4x3xf32>
    %79 = arith.mulf %77, %78 : vector<4x3xf32>
    %cst_49 = arith.constant 2.000000e+00 : f32
    %80 = vector.broadcast %cst_49 : f32 to vector<4x3xf32>
    %81 = arith.subf %80, %79 : vector<4x3xf32>
    %82 = arith.mulf %78, %81 : vector<4x3xf32>
    %cst_50 = arith.constant dense<0.000000e+00> : vector<4x24xf32>
    %83 = tpu.matmul %82, %5, %cst_50 {dimension_numbers = #tpu.dot_dimension_numbers<[1], [1], [0], [0], [0, 0, 1, 0], [], []>} : vector<4x3xf32>, vector<24x3xf32>, vector<4x24xf32> -> vector<4x24xf32>
    %84 = arith.mulf %76, %83 : vector<4x24xf32>
    %cst_51 = arith.constant dense<0.000000e+00> : vector<4x24xf32>
    %85 = tpu.matmul %68, %5, %cst_51 {dimension_numbers = #tpu.dot_dimension_numbers<[1], [1], [0], [0], [0, 0, 1, 0], [], []>} : vector<4x3xf32>, vector<24x3xf32>, vector<4x24xf32> -> vector<4x24xf32>
    %86 = arith.mulf %84, %85 : vector<4x24xf32>
    %cst_52 = arith.constant dense<0.000000e+00> : vector<4x32xf32>
    %87 = tpu.matmul %86, %49, %cst_52 {dimension_numbers = #tpu.dot_dimension_numbers<[1], [0], [0], [1], [0, 0, 1, 1], [], []>} : vector<4x24xf32>, vector<24x32xf32>, vector<4x32xf32> -> vector<4x32xf32>
    %c0_53 = arith.constant 0 : index
    %c0_54 = arith.constant 0 : index
    %c0_55 = arith.constant 0 : index
    %88 = vector.load %arg15[%c0_53, %c0_54, %c0_55] : memref<1x4x24xf32, #tpu.memory_space<vmem>>, vector<1x4x24xf32>
    %89 = vector.shape_cast %88 : vector<1x4x24xf32> to vector<4x24xf32>
    %90 = vector.shape_cast %44 : vector<4x24xf32> to vector<1x4x24xf32>
    tpu.vector_store %arg15[%c0_53, %c0_54, %c0_55], %90 {strides = array<i32>} : memref<1x4x24xf32, #tpu.memory_space<vmem>>, vector<1x4x24xf32>,
    %c0_56 = arith.constant 0 : index
    %c0_57 = arith.constant 0 : index
    %c0_58 = arith.constant 0 : index
    %91 = vector.load %arg16[%c0_56, %c0_57, %c0_58] : memref<1x4x24xf32, #tpu.memory_space<vmem>>, vector<1x4x24xf32>
    %92 = vector.shape_cast %91 : vector<1x4x24xf32> to vector<4x24xf32>
    %93 = vector.shape_cast %84 : vector<4x24xf32> to vector<1x4x24xf32>
    tpu.vector_store %arg16[%c0_56, %c0_57, %c0_58], %93 {strides = array<i32>} : memref<1x4x24xf32, #tpu.memory_space<vmem>>, vector<1x4x24xf32>,
    %c0_59 = arith.constant 0 : index
    %c0_60 = arith.constant 0 : index
    %c0_61 = arith.constant 0 : index
    %94 = vector.load %arg17[%c0_59, %c0_60, %c0_61] : memref<1x4x3xf32, #tpu.memory_space<vmem>>, vector<1x4x3xf32>
    %95 = vector.shape_cast %94 : vector<1x4x3xf32> to vector<4x3xf32>
    %96 = vector.shape_cast %28 : vector<4x3xf32> to vector<1x4x3xf32>
    tpu.vector_store %arg17[%c0_59, %c0_60, %c0_61], %96 {strides = array<i32>} : memref<1x4x3xf32, #tpu.memory_space<vmem>>, vector<1x4x3xf32>,
    %c0_62 = arith.constant 0 : index
    %c0_63 = arith.constant 0 : index
    %c0_64 = arith.constant 0 : index
    %97 = vector.load %arg18[%c0_62, %c0_63, %c0_64] : memref<1x4x3xf32, #tpu.memory_space<vmem>>, vector<1x4x3xf32>
    %98 = vector.shape_cast %97 : vector<1x4x3xf32> to vector<4x3xf32>
    %99 = vector.shape_cast %68 : vector<4x3xf32> to vector<1x4x3xf32>
    tpu.vector_store %arg18[%c0_62, %c0_63, %c0_64], %99 {strides = array<i32>} : memref<1x4x3xf32, #tpu.memory_space<vmem>>, vector<1x4x3xf32>,
    %cst_65 = arith.constant dense<0.000000e+00> : vector<4x32xf32>
    %100 = tpu.matmul %47, %0, %cst_65 {dimension_numbers = #tpu.dot_dimension_numbers<[1], [1], [0], [0], [0, 0, 1, 0], [], []>} : vector<4x32xf32>, vector<32x32xf32>, vector<4x32xf32> -> vector<4x32xf32>
    %cst_66 = arith.constant dense<0.000000e+00> : vector<4x32xf32>
    %101 = tpu.matmul %87, %1, %cst_66 {dimension_numbers = #tpu.dot_dimension_numbers<[1], [1], [0], [0], [0, 0, 1, 0], [], []>} : vector<4x32xf32>, vector<32x32xf32>, vector<4x32xf32> -> vector<4x32xf32>
    %102 = arith.addf %100, %101 : vector<4x32xf32>
    %cst_67 = arith.constant dense<0.000000e+00> : vector<4x32xf32>
    %103 = tpu.matmul %7, %2, %cst_67 {dimension_numbers = #tpu.dot_dimension_numbers<[1], [1], [0], [0], [0, 0, 1, 0], [], []>} : vector<4x32xf32>, vector<32x32xf32>, vector<4x32xf32> -> vector<4x32xf32>
    %104 = arith.addf %102, %103 : vector<4x32xf32>
    %105 = vector.broadcast %3 : vector<1x32xf32> to vector<4x32xf32>
    %106 = arith.addf %104, %105 : vector<4x32xf32>
    %107 = math.tanh %106 : vector<4x32xf32>
    %c0_68 = arith.constant 0 : index
    %c0_69 = arith.constant 0 : index
    %c0_70 = arith.constant 0 : index
    %108 = vector.load %arg14[%c0_68, %c0_69, %c0_70] : memref<1x4x32xf32, #tpu.memory_space<vmem>>, vector<1x4x32xf32>
    %109 = vector.shape_cast %108 : vector<1x4x32xf32> to vector<4x32xf32>
    %110 = vector.shape_cast %107 : vector<4x32xf32> to vector<1x4x32xf32>
    tpu.vector_store %arg14[%c0_68, %c0_69, %c0_70], %110 {strides = array<i32>} : memref<1x4x32xf32, #tpu.memory_space<vmem>>, vector<1x4x32xf32>,
    return
  }
  func.func @transform_0(%arg0: i32) -> (i32, i32, i32) {
    %c0_i32 = arith.constant 0 : i32
    %c0_i32_0 = arith.constant 0 : i32
    %c0_i32_1 = arith.constant 0 : i32
    return %arg0, %c0_i32, %c0_i32_0 : i32, i32, i32
  }
  func.func @transform_1(%arg0: i32) -> (i32, i32, i32) {
    %c0_i32 = arith.constant 0 : i32
    %c0_i32_0 = arith.constant 0 : i32
    %c0_i32_1 = arith.constant 0 : i32
    return %arg0, %c0_i32, %c0_i32_0 : i32, i32, i32
  }
  func.func @transform_2(%arg0: i32) -> (i32, i32, i32) {
    %c0_i32 = arith.constant 0 : i32
    %c0_i32_0 = arith.constant 0 : i32
    %c0_i32_1 = arith.constant 0 : i32
    return %arg0, %c0_i32, %c0_i32_0 : i32, i32, i32
  }
  func.func @transform_3(%arg0: i32) -> (i32, i32, i32) {
    %c0_i32 = arith.constant 0 : i32
    %c0_i32_0 = arith.constant 0 : i32
    %c0_i32_1 = arith.constant 0 : i32
    return %arg0, %c0_i32, %c0_i32_0 : i32, i32, i32
  }
  func.func @transform_4(%arg0: i32) -> (i32, i32, i32) {
    %c0_i32 = arith.constant 0 : i32
    %c0_i32_0 = arith.constant 0 : i32
    %c0_i32_1 = arith.constant 0 : i32
    return %arg0, %c0_i32, %c0_i32_0 : i32, i32, i32
  }
  func.func @transform_5(%arg0: i32) -> (i32, i32, i32) {
    %c0_i32 = arith.constant 0 : i32
    %c0_i32_0 = arith.constant 0 : i32
    %c0_i32_1 = arith.constant 0 : i32
    return %arg0, %c0_i32, %c0_i32_0 : i32, i32, i32
  }
  func.func @transform_6(%arg0: i32) -> (i32, i32, i32) {
    %c0_i32 = arith.constant 0 : i32
    %c0_i32_0 = arith.constant 0 : i32
    %c0_i32_1 = arith.constant 0 : i32
    return %arg0, %c0_i32, %c0_i32_0 : i32, i32, i32
  }
  func.func @transform_7(%arg0: i32) -> (i32, i32) {
    %c0_i32 = arith.constant 0 : i32
    %c0_i32_0 = arith.constant 0 : i32
    %c0_i32_1 = arith.constant 0 : i32
    return %c0_i32, %c0_i32_0 : i32, i32
  }
  func.func @transform_8(%arg0: i32) -> (i32, i32) {
    %c0_i32 = arith.constant 0 : i32
    %c0_i32_0 = arith.constant 0 : i32
    %c0_i32_1 = arith.constant 0 : i32
    return %c0_i32, %c0_i32_0 : i32, i32
  }
  func.func @transform_9(%arg0: i32) -> (i32, i32) {
    %c0_i32 = arith.constant 0 : i32
    %c0_i32_0 = arith.constant 0 : i32
    %c0_i32_1 = arith.constant 0 : i32
    return %c0_i32, %c0_i32_0 : i32, i32
  }
  func.func @transform_10(%arg0: i32) -> (i32, i32) {
    %c0_i32 = arith.constant 0 : i32
    %c0_i32_0 = arith.constant 0 : i32
    %c0_i32_1 = arith.constant 0 : i32
    return %c0_i32, %c0_i32_0 : i32, i32
  }
  func.func @transform_11(%arg0: i32) -> (i32, i32) {
    %c0_i32 = arith.constant 0 : i32
    %c0_i32_0 = arith.constant 0 : i32
    %c0_i32_1 = arith.constant 0 : i32
    return %c0_i32, %c0_i32_0 : i32, i32
  }
  func.func @transform_12(%arg0: i32) -> (i32, i32) {
    %c0_i32 = arith.constant 0 : i32
    %c0_i32_0 = arith.constant 0 : i32
    %c0_i32_1 = arith.constant 0 : i32
    return %c0_i32, %c0_i32_0 : i32, i32
  }
  func.func @transform_13(%arg0: i32) -> (i32, i32, i32) {
    %c0_i32 = arith.constant 0 : i32
    %c0_i32_0 = arith.constant 0 : i32
    %c0_i32_1 = arith.constant 0 : i32
    return %arg0, %c0_i32, %c0_i32_0 : i32, i32, i32
  }
  func.func @transform_14(%arg0: i32) -> (i32, i32, i32) {
    %c0_i32 = arith.constant 0 : i32
    %c0_i32_0 = arith.constant 0 : i32
    %c0_i32_1 = arith.constant 0 : i32
    return %arg0, %c0_i32, %c0_i32_0 : i32, i32, i32
  }
  func.func @transform_15(%arg0: i32) -> (i32, i32, i32) {
    %c0_i32 = arith.constant 0 : i32
    %c0_i32_0 = arith.constant 0 : i32
    %c0_i32_1 = arith.constant 0 : i32
    return %arg0, %c0_i32, %c0_i32_0 : i32, i32, i32
  }
  func.func @transform_16(%arg0: i32) -> (i32, i32, i32) {
    %c0_i32 = arith.constant 0 : i32
    %c0_i32_0 = arith.constant 0 : i32
    %c0_i32_1 = arith.constant 0 : i32
    return %arg0, %c0_i32, %c0_i32_0 : i32, i32, i32
  }
  func.func @transform_17(%arg0: i32) -> (i32, i32, i32) {
    %c0_i32 = arith.constant 0 : i32
    %c0_i32_0 = arith.constant 0 : i32
    %c0_i32_1 = arith.constant 0 : i32
    return %arg0, %c0_i32, %c0_i32_0 : i32, i32, i32
  }
}

</mosaic_0001>

<bundles_post_ra>
// kernel: tpu_custom_call.1
= control target key start
LH: loop header
LB: loop body
LE: loop exit
PB: predicated region body
PF: predicated region fallthrough
CT: control target
= control target key end

     0   :  { %s3747_s0 = inlined_call_operand.hbm [shape: f32[2,4,32], index: 0, kind: input, shape index: {}]   ;;  %s3748_s1 = inlined_call_operand.vmem [shape: f32[2,24,32], index: 1, kind: input, shape index: {}]   ;;  %s3749_s2 = inlined_call_operand.hbm [shape: f32[2,24,32], index: 2, kind: input, shape index: {}]   ;;  %s3750_s3 = inlined_call_operand.vmem [shape: f32[2,3,32], index: 3, kind: input, shape index: {}]   ;;  %s3751_s4 = inlined_call_operand.vmem [shape: f32[2,3,32], index: 4, kind: input, shape index: {}]   ;;  %s3752_s5 = inlined_call_operand.vmem [shape: f32[2,1,24], index: 5, kind: input, shape index: {}]   ;;  %s3753_s6 = inlined_call_operand.hbm [shape: f32[2,1,24], index: 6, kind: input, shape index: {}]   ;;  %s3754_s7 = inlined_call_operand.vmem [shape: f32[24,3], index: 7, kind: input, shape index: {}]   ;;  %s3755_s8 = inlined_call_operand.vmem [shape: f32[24,3], index: 8, kind: input, shape index: {}]   ;;  %s3756_s9 = inlined_call_operand.vmem [shape: f32[32,32], index: 9, kind: input, shape index: {}]   ;;  %s3757_s10 = inlined_call_operand.vmem [shape: f32[32,32], index: 10, kind: input, shape index: {}]   ;;  %s3758_s11 = inlined_call_operand.hbm [shape: f32[32,32], index: 11, kind: input, shape index: {}]   ;;  %s3759_s12 = inlined_call_operand.vmem [shape: f32[1,32], index: 12, kind: input, shape index: {}]   ;;  %s3760_s13 = inlined_call_operand.hbm [shape: f32[2,4,32], index: 13, kind: output, shape index: {0}]   ;;  %s3761_s14 = inlined_call_operand.hbm [shape: f32[2,4,24], index: 14, kind: output, shape index: {1}]   ;;  %s3762_s15 = inlined_call_operand.hbm [shape: f32[2,4,24], index: 15, kind: output, shape index: {2}]   ;;  %s3763_s16 = inlined_call_operand.vmem [shape: f32[2,4,3], index: 16, kind: output, shape index: {3}]   ;;  %s3764_s17 = inlined_call_operand.vmem [shape: f32[2,4,3], index: 17, kind: output, shape index: {4}]  }
   0x1   :  { %3791 = sst [smem:[#allocation25_spill]] %s3747_s0 }
   0x2   :  { %3792 = sst [smem:[#allocation26_spill]] %s3748_s1 }
   0x3   :  { %3793 = sst [smem:[#allocation27_spill]] %s3749_s2 }
   0x4   :  { %3794 = sst [smem:[#allocation28_spill]] %s3750_s3 }
   0x5   :  { %3795 = sst [smem:[#allocation29_spill]] %s3755_s8 }
   0x6   :  { %3796 = sst [smem:[#allocation30_spill]] %s3756_s9 }
   0x7   :  { %3797 = sst [smem:[#allocation31_spill]] %s3757_s10 }
   0x8   :  { %3798 = sst [smem:[#allocation32_spill]] %s3759_s12 }
   0x9   :  { %3799 = sst [smem:[#allocation33_spill]] %s3760_s13 }
   0xa   :  { %3800 = sst [smem:[#allocation34_spill]] %s3761_s14 }
   0xb   :  { %3801 = sst [smem:[#allocation35_spill]] %s3762_s15 }
   0xc   :  { %3802 = sst [smem:[#allocation36_spill]] %s3764_s17 }
   0xd   :  { %23 = vsyncpa [#allocation3], 0 }
   0xe   :  { %25 = vsyncpa [#allocation3 + $0x1], 0 }
   0xf   :  { %26 = vsyncpa [#allocation6], 0 }
  0x10   :  { %28 = vsyncpa [#allocation6 + $0x1], 0 }
  0x11   :  { %29 = vsyncpa [#allocation9], 0 }
  0x12   :  { %30 = vsyncpa [#allocation4], 0 }
  0x13   :  { %32 = vsyncpa [#allocation4 + $0x1], 0 }
  0x14   :  { %33 = vsyncpa [#allocation12], 0 }
  0x15   :  { %35 = vsyncpa [#allocation12 + $0x1], 0  ;;  %s3158_s24 = smov 0   ;;  %s3160_s25 = smov 0  }
  0x16   :  { %s3162_s26 = smov 0   ;;  %s3164_s27 = smov 0  }
  0x17 LB: > { %3803 = sst [smem:[#allocation19_spill]] %s3042_s24  ;;  %s3179_s28 = sadd.s32 1, %s3054_s27   ;;  %s3054_s27 = sphi %s3164_s27, %s3850_s27   ;;  %s3050_s26 = sphi %s3162_s26, %s3852_s26   ;;  %s3046_s25 = sphi %s3160_s25, %s3854_s25   ;;  %s3042_s24 = sphi %s3158_s24, %s3853_s24  }
  0x18   : > { %3804 = sst [smem:[#allocation20_spill]] %s3050_s26  ;;  %s48_s29 = sadd.s32 1, %s3050_s26 }
  0x19   : > { %3805 = sst [smem:[#allocation21_spill]] %s3179_s28  ;;  %s45_s0 = ssub.s32 %s3054_s27, %s3179_s28 }
  0x1a   : > { %p3769_p0 = scmp.ne.s32.totalorder %s3050_s26, %s3046_s25  ;;  %p46_p1 = scmp.eq.s32.totalorder %s45_s0, 0 }
  0x1b   : > { %p56_p2 = scmp.eq.s32.totalorder %s3054_s27, 0  ;;  %p2743_p5 = scmp.lt.s32.totalorder %s3054_s27, 2 }
  0x1c   : > { %s3188_s30 = scalar_select %p46_p1, %s3050_s26, %s48_s29  }
  0x1d   : > { %p57_p3 = por %p56_p2, %p3769_p0  ;;  %s3196_s18 = sand.u32 1, %s3050_s26  }
  0x1e   : > { %3806 = sst [smem:[#allocation22_spill]] %s3188_s30  ;;  %s551_s19 = sand.u32 1, %s3054_s27  }
  0x1f   : > { %s2698_s1 = smul.u32 24, %s3196_s18  ;;  %p3200_p6 = pnand %p2743_p5, %p57_p3 }
  0x20   : > { %s2699_s21 = smul.u32 384, %s3054_s27  ;;  %s3808_s2 = sld [smem:[#allocation27_spill]] }
  0x21   : > { %s3807_s20 = scalar_select %p3200_p6, 1, 0 }
  0x22   : > { %s555_s22 = scalar_lea.vmem [#allocation5], %s2698_s1  ;;  %s3212_s28 = scalar_lea.sflag [#allocation6], %s551_s19 }
  0x23   : > { %s562_s23 = sshll.u32 %s555_s22, 4  ;;  %p3218_p8 = pneg %p3200_p6  ;;  %s3210_s23 = int_to_ptr.vmem [resolvable:$true] %s562_s23 }
  0x25   : > { %s3809_s12 = scalar_select %p3218_p8, 1, 0 }
  0x26   : > { %s3208_s30 = scalar_lea.hbm %s3808_s2, %s2699_s21  ;;  %s2807_s22 = scalar_lea.hbm %s3808_s2, 768 }
  0x27   : > { %s2802_s13 = scalar_lea.hbm %s3208_s30, 384  ;;  %p2808_p11 = scmp.lt.u32.totalorder %s3208_s30, %s3808_s2 }
  0x28   : > { %p2803_p7 = scmp.ne.s32.totalorder %s3208_s30, %s2802_s13  ;;  %p2809_p12 = scmp.lt.u32.totalorder %s2807_s22, %s2802_s13 }
  0x29   : > { %p2811_p1 = scmp.lt.u32.totalorder %s2802_s13, %s3208_s30 }
  0x2a   : > { %p2805_p9 = pnand %p3218_p8, %p2803_p7  ;;  %p2810_p13 = por %p2809_p12, %p2808_p11 }
  0x2c   : > { %p2806_p10 = pneg %p2805_p9  ;;  %p2812_p2 = por %p2811_p1, %p2810_p13 }
  0x2e   : > { %p2813_p3 = pnand %p2812_p2, %p2806_p10 }
  0x30   : > { %2816 = shalt.err (!%p2813_p3)
}
  0x31   : > { %s2817_s19 = scalar_lea.vmem %s3210_s23, 384  ;;  %s3056_s1 = smov [#allocation5]  }
  0x32   : > { %p2818_p5 = scmp.ne.s32.totalorder %s3210_s23, %s2817_s19  ;;  %s2822_s21 = sshll.u32 %s3056_s1, 4  ;;  %s2823_s21 = int_to_ptr.vmem [resolvable:$false] %s2822_s21 }
  0x33   : > { %s2824_s0 = scalar_lea.vmem %s2823_s21, 768  ;;  %p2825_p4 = scmp.lt.s32.totalorder %s3210_s23, %s2823_s21 }
  0x34   : > { %p2820_p7 = pnand %p2818_p5, %p3218_p8  ;;  %p2826_p0 = scmp.lt.s32.totalorder %s2824_s0, %s2817_s19 }
  0x36   : > { %p2821_p9 = pneg %p2820_p7  ;;  %p2827_p11 = por %p2826_p0, %p2825_p4 }
  0x38   : > { %p2828_p12 = pnand %p2827_p11, %p2821_p9 }
  0x3a   : > { %2831 = shalt.err (!%p2828_p12)
}
  0x3b   : > { %s3771_s13 = smov 128   ;;  %s3772_s22 = smov 8  }
  0x3c   : > { %2728 = dma.hbm_to_vmem [thread:$0]  (!%p3200_p6), %s3208_s30, 384, %s3210_s23, %s3212_s28, %s3771_s13, %s3771_s13, %s3772_s22  }
  0x3d   : > { %s3246_s29 = sadd.s32 4294967295, %s3054_s27   ;;  %s3770_s19 = sadd.s32 4294967294, %s3054_s27  }
  0x3e   : > { %p61_p0 = scmp.ne.s32.totalorder %s3046_s25, %s3042_s24  ;;  %p3783_p4 = scmp.eq.s32.totalorder %s3246_s29, 0 }
  0x3f   : > { %p367_p10 = scmp.eq.s32.totalorder %s3246_s29, 1  ;;  %p373_p13 = scmp.eq.s32.totalorder %s3770_s19, 1 }
  0x40   : > { %p3257_p1 = por %p3783_p4, %p61_p0  ;;  %p2370_p2 = scmp.ge.s32.totalorder %s3054_s27, 1 }
  0x41   : > { %p3811_p3 = scmp.ne.s32.totalorder %s3050_s26, %s3046_s25  ;;  %p3269_p7 = por %p373_p13, %p61_p0 }
  0x42   : > { %s3810_s1 = scalar_select %p3257_p1, 1, 0 }
  0x43   : > { %p3265_p5 = por %p367_p10, %p3811_p3  ;;  %p484_p9 = scmp.lt.s32.totalorder %s3054_s27, 3 }
  0x44   : > { %s3814_s23 = scalar_select %p3269_p7, 1, 0 }
  0x45   : > { %s3812_s30 = scalar_select %p3265_p5, 1, 0 }
  0x46   : > { %3815 = sst [smem:[#allocation24_spill]] %s3814_s23  ;;  %p3274_p11 = pnand %p2370_p2, %p484_p9 }
  0x47   : > { %3813 = sst [smem:[#allocation23_spill]] %s3812_s30  ;;  %s3059_s0 = smov [#allocation8]  }
  0x48   : > { %s3816_s21 = scalar_select %p3274_p11, 1, 0 }
  0x49   : > { %s508_s19 = sshll.u32 %s3059_s0, 4  ;;  %s2373_s13 = sshll.u32 %s3196_s18, 2  ;;  %s3278_s19 = int_to_ptr.vmem [resolvable:$true] %s508_s19 }
  0x4a   : > { %p2718_p12 = pneg %p3274_p11  ;;  %s2374_s22 = sshll.u32 %s3054_s27, 6 }
  0x4b   : > { %s529_s2 = scalar_lea.vmem [#allocation2], %s2373_s13  ;;  %s3818_s14 = sld [smem:[#allocation25_spill]] }
  0x4c   : > { %s536_s26 = sshll.u32 %s529_s2, 4  ;;  %p3286_p0 = pnand %p2718_p12, %p3783_p4  ;;  %s3295_s26 = int_to_ptr.vmem [resolvable:$true] %s536_s26 }
  0x4d   : > { %s2832_s17 = scalar_lea.hbm %s3758_s11, 512 }
  0x4e   : > { %p2833_p10 = scmp.ne.s32.totalorder %s3758_s11, %s2832_s17  ;;  %p2834_p13 = pneg %p3286_p0 }
  0x4f   : > { %p2839_p9 = scmp.lt.u32.totalorder %s2832_s17, %s3758_s11 }
  0x50   : > { %p2835_p2 = pnand %p2834_p13, %p2833_p10 }
  0x51   : > { %s3293_s30 = scalar_lea.hbm %s3818_s14, %s2374_s22 }
  0x52   : > { %p2836_p3 = pneg %p2835_p2 }
  0x54   : > { %p2841_p12 = pnand %p2839_p9, %p2836_p3 }
  0x56   : > { %2844 = shalt.err (!%p2841_p12)
}
  0x57   : > { %s2845_s22 = scalar_lea.vmem %s3278_s19, 512  ;;  %p2853_p1 = scmp.lt.s32.totalorder %s3278_s19, %s3278_s19 }
  0x58   : > { %p2846_p4 = scmp.ne.s32.totalorder %s3278_s19, %s2845_s22  ;;  %p2854_p11 = scmp.lt.s32.totalorder %s2845_s22, %s2845_s22 }
  0x5a   : > { %p2848_p7 = pnand %p2846_p4, %p2834_p13  ;;  %p2855_p6 = por %p2854_p11, %p2853_p1 }
  0x5c   : > { %p2849_p5 = pneg %p2848_p7 }
  0x5e   : > { %p2856_p8 = pnand %p2855_p6, %p2849_p5 }
  0x60   : > { %2859 = shalt.err (!%p2856_p8)
}
  0x61   : > { %s3819_s9 = smov 8   ;;  %s3820_s8 = smov 128  }
  0x62   : > { %2721 = dma.hbm_to_vmem [thread:$0]  (!%p3286_p0), %s3758_s11, 512, %s3278_s19, [#allocation9], %s3820_s8, %s3820_s8, %s3819_s9  }
  0x63   : > { %s526_s23 = scalar_lea.sflag [#allocation3], %s3196_s18  ;;  %s2860_s13 = scalar_lea.hbm %s3293_s30, 64 }
  0x64   : > { %p2861_p6 = scmp.ne.s32.totalorder %s3293_s30, %s2860_s13  ;;  %p3821_p8 = scmp.ne.s32.totalorder %s3809_s12, 0 }
  0x65   : > { %s2865_s15 = scalar_lea.hbm %s3818_s14, 128  ;;  %p2866_p5 = scmp.lt.u32.totalorder %s3293_s30, %s3818_s14 }
  0x66   : > { %p2863_p4 = pnand %p2861_p6, %p3821_p8  ;;  %p2867_p7 = scmp.lt.u32.totalorder %s2865_s15, %s2860_s13 }
  0x67   : > { %p2869_p10 = scmp.lt.u32.totalorder %s2860_s13, %s3293_s30 }
  0x68   : > { %p2864_p1 = pneg %p2863_p4  ;;  %p2868_p11 = por %p2867_p7, %p2866_p5 }
  0x6a   : > { %p2870_p13 = por %p2869_p10, %p2868_p11 }
  0x6c   : > { %p2871_p2 = pnand %p2870_p13, %p2864_p1 }
  0x6e   : > { %2874 = shalt.err (!%p2871_p2)
}
  0x6f   : > { %s2875_s19 = scalar_lea.vmem %s3295_s26, 64  ;;  %s3060_s9 = smov [#allocation2]  }
  0x70   : > { %p2876_p0 = scmp.ne.s32.totalorder %s3295_s26, %s2875_s19  ;;  %s2880_s8 = sshll.u32 %s3060_s9, 4  ;;  %s2881_s8 = int_to_ptr.vmem [resolvable:$false] %s2880_s8 }
  0x71   : > { %s2882_s0 = scalar_lea.vmem %s2881_s8, 128  ;;  %p2883_p12 = scmp.lt.s32.totalorder %s3295_s26, %s2881_s8 }
  0x72   : > { %p2878_p3 = pnand %p2876_p0, %p3821_p8  ;;  %p2884_p6 = scmp.lt.s32.totalorder %s2882_s0, %s2875_s19 }
  0x74   : > { %p2879_p9 = pneg %p2878_p3  ;;  %p2885_p4 = por %p2884_p6, %p2883_p12 }
  0x76   : > { %p2886_p5 = pnand %p2885_p4, %p2879_p9 }
  0x78   : > { %2889 = shalt.err (!%p2886_p5)
}
  0x79   : > { %p3822_p1 = scmp.ne.s32.totalorder %s3807_s20, 0  ;;  %s3823_s10 = sshll.u32 %s3054_s27, 4 }
  0x7a   : > { %s3349_s24 = scalar_lea.hbm %s3753_s6, %s3823_s10  ;;  %s595_s2 = scalar_lea.vmem [#allocation7], %s3196_s18 }
  0x7b   : > { %2725 = dma.hbm_to_vmem [thread:$0]  (!%p3822_p1), %s3293_s30, 64, %s3295_s26, %s526_s23  }
  0x7c   : > { %s602_s15 = sshll.u32 %s595_s2, 4  ;;  %s2890_s22 = scalar_lea.hbm %s3349_s24, 16  ;;  %s603_s15 = int_to_ptr.vmem [resolvable:$true] %s602_s15 }
  0x7d   : > { %p2891_p7 = scmp.ne.s32.totalorder %s3349_s24, %s2890_s22  ;;  %s2895_s30 = scalar_lea.hbm %s3753_s6, 32 }
  0x7e   : > { %p2896_p13 = scmp.lt.u32.totalorder %s3349_s24, %s3753_s6  ;;  %p2897_p2 = scmp.lt.u32.totalorder %s2895_s30, %s2890_s22 }
  0x7f   : > { %p2893_p11 = pnand %p2891_p7, %p3821_p8  ;;  %p2899_p3 = scmp.lt.u32.totalorder %s2890_s22, %s3349_s24 }
  0x80   : > { %p2898_p0 = por %p2897_p2, %p2896_p13 }
  0x81   : > { %p2894_p10 = pneg %p2893_p11 }
  0x82   : > { %p2900_p9 = por %p2899_p3, %p2898_p0 }
  0x84   : > { %p2901_p12 = pnand %p2900_p9, %p2894_p10 }
  0x86   : > { %2904 = shalt.err (!%p2901_p12)
}
  0x87   : > { %s2905_s18 = scalar_lea.vmem %s603_s15, 16  ;;  %s3061_s8 = smov [#allocation7]  }
  0x88   : > { %p2906_p6 = scmp.ne.s32.totalorder %s603_s15, %s2905_s18  ;;  %s2910_s0 = sshll.u32 %s3061_s8, 4  ;;  %s2911_s0 = int_to_ptr.vmem [resolvable:$false] %s2910_s0 }
  0x89   : > { %s2912_s10 = scalar_lea.vmem %s2911_s0, 32  ;;  %p2913_p7 = scmp.lt.s32.totalorder %s603_s15, %s2911_s0 }
  0x8a   : > { %p2908_p4 = pnand %p2906_p6, %p3821_p8  ;;  %p2914_p11 = scmp.lt.s32.totalorder %s2912_s10, %s2905_s18 }
  0x8c   : > { %p2909_p5 = pneg %p2908_p4  ;;  %p2915_p1 = por %p2914_p11, %p2913_p7 }
  0x8e   : > { %p2916_p2 = pnand %p2915_p1, %p2909_p5 }
  0x90   : > { %2919 = shalt.err (!%p2916_p2)
}
  0x91   : > { %p3824_p13 = scmp.ne.s32.totalorder %s3807_s20, 0  ;;  %p3825_p10 = scmp.ne.s32.totalorder %s3816_s21, 0 }
  0x92   : > { %s3373_s12 = sand.u32 (!%p3825_p10), 1, %s3046_s25   ;;  %p3826_p8 = scmp.ne.s32.totalorder (!%p3825_p10), %s3810_s1, 0 }
  0x93   : > { %2731 = dma.hbm_to_vmem [thread:$0]  (!%p3824_p13), %s3349_s24, 16, %s603_s15, %s3212_s28  }
  0x94   : > { %611 = sbr.rel (%p3825_p10) target bundleno = 2300 (0x8fc), region = 72  ;;  %s3376_s17 = sshll.u32 (!%p3825_p10), %s3373_s12, 2 }
  0x95   : > { %s614_s13 = scalar_lea.sflag (!%p3825_p10), [#allocation3], %s3373_s12  ;;  %s617_s2 = scalar_lea.vmem (!%p3825_p10), [#allocation2], %s3376_s17 }
  0x9b   : > { %3021 = dma.done.wait (%p3826_p8), %s614_s13, 64  }
  0x9c   : > { %3023 = vsyncadd (%p3826_p8), %s614_s13, 4294967232  ;;  %s622_s28 = sand.u32 1, %s3246_s29   ;;  %s2700_s20 = smul.u32 24, %s3373_s12 }
  0x9d   : > { %s623_s21 = scalar_lea.sflag [#allocation6], %s622_s28 }
  0x9e   : > { %s3388_s24 = scalar_lea.vmem [#allocation5], %s2700_s20 }
  0x9f   : > { %3025 = dma.done.wait (%p3826_p8), %s623_s21, 400  }
  0xa0   : > { %3027 = vsyncadd (%p3826_p8), %s623_s21, 4294966896  ;;  %s634_s15 = scalar_lea.vmem [#allocation7], %s3373_s12  ;;  %p3827_p1 = scmp.eq.s32.totalorder %s3246_s29, 0 }
  0xa2   : > { %3029 = dma.done.wait (%p3827_p1), [#allocation9], 512   ;;  %p3828_p0 = pmov %p3827_p1 }
  0xa3   : > { %p732_p3 = scmp.lt.s32.totalorder %s3246_s29, 1  ;;  %v3062_v0 = vmov 0.0|0.0   ;;  %v3063_v1 = vmov 0.0   ;;  %vm3064_vm0 = vmmov 0   ;;  %vm781_vm1 = vcmask 261120   ;;  %s3829_s3 = sld [smem:[#allocation28_spill]] }
  0xa4   : > { %3031 = vsyncadd (%p3828_p0), [#allocation9], 4294966784  ;;  %2638 = vmatprep.subr.bf16.mxu1 %v3062_v0  ;;  %2505 = vmatprep.subr.mxu0 %v3063_v1  ;;  %s3830_s8 = sld [smem:[#allocation26_spill]]  ;;  %v3436_v7 = vld [vmem:[%s617_s2] sm:$0xf]  ;;  %vm958_vm3 = vcmask 191488  }
  0xa5   : > { %s3403_s22 = scalar_select %p732_p3, %s3246_s29, 1  ;;  %2516 = vmatprep.mubr.msk.f32.mxu1 %vm3064_vm0, %v3063_v1  ;;  %2507 = vmatprep.mubr.msk.f32.mxu0 %vm3064_vm0, %v3063_v1  ;;  %vm3422_vm2 = vmpackc.low %vm781_vm1, %vm781_vm1  ;;  %vm858_vm4 = vcmask 19456   ;;  %v769_v17 = vld [vmem:[%s3754_s7] sm:$0xff]  ;;  %v770_v18 = vld [vmem:[%s3754_s7 + $0x8] sm:$0xff]  ;;  %vm965_vm5 = vcmask 195584   ;;  %vm1043_vm6 = vcmask 23552  }
  0xa6   : > { %v2643_v19 = vpack.c.bf16 %v770_v18, %v769_v17  ;;  %v771_v20 = vld [vmem:[%s3754_s7 + $0x10] sm:$0xff]  ;;  %vm3474_vm7 = vmpackc.low %vm1043_vm6, %vm1043_vm6  ;;  %v1274_v49 = vld [vmem:[%s3388_s24] sm:$0xff]  ;;  %s712_s13 = scalar_lea.vmem [#allocation11], %s3376_s17  ;;  %s3835_s20 = sld [smem:[#allocation29_spill]] }
  0xa7   : > { %s2701_s1 = smul.u32 24, %s3403_s22  ;;  %s3411_s19 = sshll.u32 %s3403_s22, 2  ;;  %v1275_v50 = vld [vmem:[%s3388_s24 + $0x8] sm:$0xff]  ;;  %v3530_v56 = vld [vmem:[%s3388_s24 + $0x10] sm:$0xff]  ;;  %v2407_v62 = vld [vmem:[%s634_s15] ss:$0 sm:$0xff] }
  0xa8   : > { %s747_s2 = scalar_lea.vmem %s3752_s5, %s3403_s22  ;;  %s744_s18 = scalar_lea.vmem %s3751_s4, %s3411_s19  ;;  %v3516_v54 = vpack.c.bf16 %v1275_v50, %v1274_v49 }
  0xa9   : > { %s740_s23 = scalar_lea.vmem %s3829_s3, %s3411_s19  ;;  %v2390_v11 = vld [vmem:[%s747_s2] ss:$0 sm:$0xff]  ;;  %s751_s10 = scalar_lea.vmem %s3763_s16, %s3411_s19 }
  0xaa   : > { %s736_s0 = scalar_lea.vmem %s3830_s8, %s2701_s1  ;;  %v779_v6 = vld [vmem:[%s740_s23] sm:$0x7]  ;;  %s3836_s23 = sld [smem:[#allocation36_spill]] }
  0xab   : > { %v776_v2 = vld [vmem:[%s736_s0] sm:$0xff]  ;;  %v777_v3 = vld [vmem:[%s736_s0 + $0x8] sm:$0xff]  ;;  %2506 = vmatpush3.xpose.msk.msra.mxu0 %vm781_vm1, %v779_v6  ;;  %v3442_v8 = vld [vmem:[%s736_s0 + $0x10] sm:$0xff]  ;;  %s3837_s8 = sld [smem:[#allocation31_spill]]  ;;  %s3838_s22 = sld [smem:[#allocation30_spill]] }
  0xac   : > { %v3426_v5 = vpack.c.bf16 %v777_v3, %v776_v2  ;;  %2645 = vmatprep.subr.bf16.mxu0 %v3062_v0  ;;  %v1277_v37 = vld [vmem:[%s744_s18] sm:$0x7]  ;;  %s3839_s24 = sld [smem:[#allocation23_spill]]  ;;  %s3641_s2 = sshll.u32 %s3246_s29, 6 }
  0xad   : > { %s3840_s15 = sld [smem:[#allocation34_spill]]  ;;  %s2076_s30 = sshll.u32 %s712_s13, 4  ;;  %s2077_s30 = int_to_ptr.vmem [resolvable:$true] %s2076_s30 }
  0xae   : > { %2641 = vmatpush3.bf16.xpose.msk.msra.mxu1 %vm3422_vm2, %v3426_v5  ;;  %2508 = vmatmul.mubr.msk.f32.vlgmr.msra.gmra.mrb[0].mxu0 %vm781_vm1, %v3436_v7  ;;  %s3065_s18 = smov [#allocation11]  }
  0xaf   : > { %2514 = vmatprep.subr.mxu1 %v3063_v1  ;;  %2534 = vmatprep.mubr.msk.f32.mxu0 %vm3064_vm0, %v3063_v1  ;;  %s2924_s0 = sshll.u32 %s3065_s18, 4  ;;  %s2925_s0 = int_to_ptr.vmem [resolvable:$false] %s2924_s0 }
  0xb0   : > { %2648 = vmatpush3.bf16.xpose.msk.msra.mxu0 %vm3474_vm7, %v2643_v19  ;;  %s755_s9 = scalar_lea.vmem %s3836_s23, %s3411_s19  ;;  %s3653_s23 = scalar_lea.sflag [#allocation12], %s622_s28 }
  0xb1   : > { %2532 = vmatprep.subr.mxu0 %v3063_v1  ;;  %s2920_s19 = scalar_lea.vmem %s2077_s30, 64  ;;  %p2927_p5 = scmp.lt.s32.totalorder %s2077_s30, %s2925_s0 }
  0xb2   : > { %p2921_p9 = scmp.ne.s32.totalorder %s2077_s30, %s2920_s19  ;;  %p3841_p12 = scmp.ne.s32.totalorder %s3839_s24, 0 }
  0xb3   : > { %s3647_s26 = scalar_lea.hbm %s3840_s15, %s3641_s2 }
  0xb4   : > { %p2922_p6 = pnand %p2921_p9, %p3841_p12 }
  0xb6   : > { %2515 = vmatpush3.xpose.msk.msra.mxu1 %vm781_vm1, %v3442_v8  ;;  %p2923_p4 = pneg %p2922_p6 }
  0xb7   : > { %2642 = vmatprep.subr.bf16.mxu1 %v3062_v0 }
  0xb8   : > { %2533 = vmatpush3.xpose.msk.msra.mxu0 %vm1043_vm6, %v771_v20 }
  0xb9   : > { %2517 = vmatmul.mubr.msk.f32.vlgmr.msra.gmra.mrb[0].mxu1 %vm781_vm1, %v3436_v7  ;;  %2653 = vmatprep.subr.bf16.mxu0 %v3062_v0 }
  0xba   : > { %2525 = vmatprep.mubr.msk.f32.mxu1 %vm3064_vm0, %v3063_v1  ;;  %2644 = vmatpush3.bf16.msra.mxu1 %v2643_v19 }
  0xbb   : > { %2523 = vmatprep.subr.mxu1 %v3063_v1 }
  0xbe   : > { %2524 = vmatpush3.msra.mxu1 %v771_v20 }
  0xbf   : > { %2649 = vmatprep.subr.bf16.mxu1 %v3062_v0 }
 0x181   : > { %v854_v9 = vpop.f32.mrb[0].mxu0 }
 0x182   : > { %v2509_v10 = vpop.f32.mrb[1].mxu0  ;;  %v859_v16 = vsel %vm858_vm4, %v854_v9, -inf }
 0x183   : > { %v773_v10 = vld [vmem:[%s3835_s20 + $0x8] sm:$0xff] }
 0x18c   : > { %v954_v12 = vpop.f32.mrb[0].mxu1 }
 0x18d   : > { %v955_v13 = vadd.f32 %v2390_v11, %v954_v12  ;;  %v2518_v14 = vpop.f32.mrb[1].mxu1  ;;  %v774_v12 = vld [vmem:[%s3835_s20 + $0x10] sm:$0xff] }
 0x18f   : > { %v959_v15 = vsel %vm958_vm3, %v955_v13, -inf }
 0x190   : > { %960 = vmax.xlane.f32.xlu0 %v959_v15 }
 0x194   : > { %860 = vmax.xlane.f32.xlu0 %v859_v16 }
 0x21d   : > { %v961_v21 = vpop.xlane.xlu0 %960 }
 0x21e   : > { %v962_v22 = vsub.f32 %v955_v13, %v961_v21 }
 0x220   : > { %v963_v23 = vmul.f32 1.442695, %v962_v22 }
 0x221   : > { %v861_v24 = vpop.xlane.xlu0 %860 }
 0x222   : > { %2784 = vpow2.f32 %v963_v23  ;;  %v862_v25 = vsub.f32 %v854_v9, %v861_v24  ;;  %v772_v9 = vld [vmem:[%s3835_s20] sm:$0xff] }
 0x223   : > { %v2661_v11 = vpack.c.bf16 %v773_v10, %v772_v9 }
 0x224   : > { %v863_v26 = vmul.f32 1.442695, %v862_v25 }
 0x226   : > { %2786 = vpow2.f32 %v863_v26 }
 0x22c   : > { %v2785_v27 = vpop.eup %2784 }
 0x22d   : > { %2526 = vmatmul.mubr.msk.f32.vlgmr.msra.gmra.mrb[2].mxu1 %vm965_vm5, %v2785_v27 }
 0x22e   : > { %2543 = vmatprep.mubr.msk.f32.mxu1 %vm3064_vm0, %v3063_v1  ;;  %2652 = vmatpush3.bf16.xpose.msk.msra.mxu1 %vm3474_vm7, %v2643_v19 }
 0x22f   : > { %2541 = vmatprep.subr.mxu1 %v3063_v1 }
 0x230   : > { %v2787_v28 = vpop.eup %2786 }
 0x231   : > { %v865_v29 = vsel %vm858_vm4, %v2787_v28, 0.0 }
 0x232   : > { %866 = vadd.xlane.f32.xlu1 %v865_v29 }
 0x236   : > { %2542 = vmatpush3.xpose.msk.msra.mxu1 %vm1043_vm6, %v771_v20 }
 0x237   : > { %2555 = vmatprep.subr.mxu1 %v3063_v1 }
 0x2bf   : > { %v867_v31 = vpop.xlane.xlu1 %866 }
 0x2c0   : > { %2788 = vrcp.f32 %v867_v31 }
 0x2ca   : > { %v2789_v32 = vpop.eup %2788 }
 0x2cb   : > { %v869_v33 = vmul.f32 %v2789_v32, %v867_v31  ;;  %v760_v31 = vld [vmem:[%s3837_s8] sm:$0xff] }
 0x2cd   : > { %v870_v34 = vsub.f32 2.0, %v869_v33 }
 0x2cf   : > { %v871_v35 = vmul.f32 %v2789_v32, %v870_v34  ;;  %v761_v32 = vld [vmem:[%s3837_s8 + $0x8] sm:$0xff]  ;;  %v762_v34 = vld [vmem:[%s3837_s8 + $0x10] sm:$0xff] }
 0x2d0   : > { %v2675_v33 = vpack.c.bf16 %v761_v32, %v760_v31 }
 0x2d1   : > { %v872_v36 = vmul.f32 %v2787_v28, %v871_v35  ;;  %v763_v35 = vld [vmem:[%s3837_s8 + $0x18] sm:$0xff] }
 0x2d3   : > { %1766 = vst.msk [vmem:[%s751_s10] sm:$0xf] %vm858_vm4, %v872_v36  ;;  %2544 = vmatmul.mubr.msk.f32.vlgmr.msra.gmra.mrb[4].mxu1 %vm1043_vm6, %v872_v36  ;;  %v2679_v36 = vpack.c.bf16 %v763_v35, %v762_v34  ;;  %s2926_s10 = scalar_lea.vmem %s2925_s0, 128 }
 0x2d4   : > { %2556 = vmatpush3.xpose.msk.msra.mxu1 %vm781_vm1, %v1277_v37  ;;  %2557 = vmatprep.mubr.msk.f32.mxu1 %vm3064_vm0, %v3063_v1  ;;  %v756_v37 = vld [vmem:[%s3838_s22] sm:$0xff]  ;;  %p2928_p7 = scmp.lt.s32.totalorder %s2926_s10, %s2920_s19 }
 0x2d5   : > { %2660 = vmatprep.subr.bf16.mxu1 %v3062_v0 }
 0x2d6   : > { %p2929_p11 = por %p2928_p7, %p2927_p5 }
 0x2d7   : > { %2558 = vmatmul.mubr.msk.f32.vlgmr.msra.gmra.mrb[6].mxu1 %vm781_vm1, %v3436_v7 }
 0x2d8   : > { %2575 = vmatprep.mubr.msk.f32.mxu1 %vm3064_vm0, %v3063_v1  ;;  %2662 = vmatpush3.bf16.msra.mxu1 %v2661_v11  ;;  %p2930_p2 = pnand %p2929_p11, %p2923_p4 }
 0x2d9   : > { %2573 = vmatprep.subr.mxu1 %v3063_v1 }
 0x2dc   : > { %2574 = vmatpush3.msra.mxu1 %v774_v12 }
 0x2dd   : > { %2663 = vmatprep.subr.bf16.mxu1 %v3062_v0 }
 0x300   : > { %v1035_v38 = vpop.f32.mrb[2].mxu1 }
 0x301   : > { %2790 = vrcp.f32 %v1035_v38  ;;  %v2527_v39 = vpop.f32.mrb[3].mxu1 }
 0x30b   : > { %v2791_v40 = vpop.eup %2790 }
 0x30c   : > { %v1040_v41 = vmul.f32 %v2791_v40, %v1035_v38  ;;  %v757_v38 = vld [vmem:[%s3838_s22 + $0x8] sm:$0xff] }
 0x30e   : > { %v1041_v42 = vsub.f32 2.0, %v1040_v41 }
 0x310   : > { %v1042_v43 = vmul.f32 %v2791_v40, %v1041_v42  ;;  %v2683_v42 = vpack.c.bf16 %v757_v38, %v756_v37 }
 0x312   : > { %2535 = vmatmul.mubr.msk.f32.vlgmr.msra.gmra.mrb[2].mxu0 %vm1043_vm6, %v1042_v43 }
 0x313   : > { %2655 = vmatpush3.bf16.msra.mxu0 %v3426_v5  ;;  %2552 = vmatprep.mubr.msk.f32.mxu0 %vm3064_vm0, %v3063_v1 }
 0x314   : > { %2550 = vmatprep.subr.mxu0 %v3063_v1 }
 0x317   : > { %2551 = vmatpush3.msra.mxu0 %v3442_v8 }
 0x318   : > { %2656 = vmatprep.subr.bf16.mxu0 %v3062_v0 }
 0x3a6   : > { %v1196_v44 = vpop.f32.mrb[4].mxu1 }
 0x3a7   : > { %v2545_v45 = vpop.f32.mrb[5].mxu1 }
 0x3a8   : > { %v759_v45 = vld [vmem:[%s3838_s22 + $0x18] sm:$0xff] }
 0x3aa   : > { %v1348_v46 = vpop.f32.mrb[6].mxu1 }
 0x3ab   : > { %v1352_v47 = vsel %vm858_vm4, %v1348_v46, -inf  ;;  %v2559_v48 = vpop.f32.mrb[7].mxu1 }
 0x3ac   : > { %1353 = vmax.xlane.f32.xlu0 %v1352_v47  ;;  %v764_v47 = vld [vmem:[#allocation8] sm:$0xff]  ;;  %v765_v48 = vld [vmem:[#allocation8 + $0x8] sm:$0xff] }
 0x3ad   : > { %v2691_v49 = vpack.c.bf16 %v765_v48, %v764_v47 }
 0x3e5   : > { %v1122_v51 = vpop.f32.mrb[2].mxu0 }
 0x3e6   : > { %v1126_v52 = vmul.f32 %v2785_v27, %v1122_v51  ;;  %v2536_v53 = vpop.f32.mrb[3].mxu0 }
 0x3e7   : > { %v767_v53 = vld [vmem:[#allocation8 + $0x18] sm:$0xff] }
 0x3e8   : > { %v1200_v55 = vmul.f32 %v1196_v44, %v1126_v52  ;;  %1764 = vst.msk [vmem:[%s712_s13] sm:$0xf] %vm958_vm3, %v1126_v52  ;;  %v758_v44 = vld [vmem:[%s3838_s22 + $0x10] sm:$0xff] }
 0x3e9   : > { %v766_v52 = vld [vmem:[#allocation8 + $0x10] sm:$0xff] }
 0x3ea   : > { %2553 = vmatmul.mubr.msk.f32.vlgmr.msra.gmra.mrb[4].mxu0 %vm965_vm5, %v1200_v55 }
 0x3eb   : > { %2659 = vmatpush3.bf16.xpose.msk.msra.mxu0 %vm3422_vm2, %v3516_v54  ;;  %2566 = vmatprep.mubr.msk.f32.mxu0 %vm3064_vm0, %v3063_v1 }
 0x3ec   : > { %2564 = vmatprep.subr.mxu0 %v3063_v1 }
 0x3f3   : > { %2565 = vmatpush3.xpose.msk.msra.mxu0 %vm781_vm1, %v3530_v56 }
 0x3f4   : > { %2667 = vmatprep.subr.bf16.mxu0 %v3062_v0 }
 0x3f6   : > { %2567 = vmatmul.mubr.msk.f32.vlgmr.msra.gmra.mrb[6].mxu0 %vm781_vm1, %v3436_v7 }
 0x3f7   : > { %2593 = vmatprep.mubr.msk.f32.mxu0 %vm3064_vm0, %v3063_v1  ;;  %2670 = vmatpush3.bf16.xpose.msk.msra.mxu0 %vm3474_vm7, %v2661_v11 }
 0x3f8   : > { %2591 = vmatprep.subr.mxu0 %v3063_v1 }
 0x3ff   : > { %2592 = vmatpush3.xpose.msk.msra.mxu0 %vm1043_vm6, %v774_v12 }
 0x400   : > { %2674 = vmatprep.subr.bf16.mxu0 %v3062_v0 }
 0x439   : > { %v1354_v57 = vpop.xlane.xlu0 %1353 }
 0x43a   : > { %v1355_v58 = vsub.f32 %v1348_v46, %v1354_v57  ;;  %v2687_v46 = vpack.c.bf16 %v759_v45, %v758_v44 }
 0x43c   : > { %v1356_v60 = vmul.f32 1.442695, %v1355_v58 }
 0x43e   : > { %2792 = vpow2.f32 %v1356_v60 }
 0x448   : > { %v2793_v5 = vpop.eup %2792 }
 0x449   : > { %v1358_v8 = vsel %vm858_vm4, %v2793_v5, 0.0 }
 0x4bd   : > { %v3539_v59 = vpop.f32.mrb[4].mxu0 }
 0x4be   : > { %v2554_v61 = vpop.f32.mrb[5].mxu0 }
 0x4c9   : > { %v1447_v63 = vpop.f32.mrb[6].mxu0 }
 0x4ca   : > { %v1448_v2 = vadd.f32 %v2407_v62, %v1447_v63  ;;  %v2568_v3 = vpop.f32.mrb[7].mxu0 }
 0x4cc   : > { %v1451_v6 = vsel %vm958_vm3, %v1448_v2, -inf }
 0x4cd   : > { %1452 = vmax.xlane.f32.xlu1 %v1451_v6 }
 0x4d1   : > { %1359 = vadd.xlane.f32.xlu1 %v1358_v8 }
 0x55a   : > { %v1453_v13 = vpop.xlane.xlu1 %1452 }
 0x55b   : > { %v1454_v14 = vsub.f32 %v1448_v2, %v1453_v13 }
 0x55d   : > { %v1455_v15 = vmul.f32 1.442695, %v1454_v14 }
 0x55e   : > { %v1360_v16 = vpop.xlane.xlu1 %1359 }
 0x55f   : > { %2794 = vpow2.f32 %v1455_v15 }
 0x560   : > { %2796 = vrcp.f32 %v1360_v16 }
 0x569   : > { %v2795_v17 = vpop.eup %2794 }
 0x56a   : > { %v2797_v18 = vpop.eup %2796  ;;  %2576 = vmatmul.mubr.msk.f32.vlgmr.msra.gmra.mrb[8].mxu1 %vm965_vm5, %v2795_v17 }
 0x56b   : > { %v1362_v19 = vmul.f32 %v2797_v18, %v1360_v16  ;;  %2666 = vmatpush3.bf16.xpose.msk.msra.mxu1 %vm3474_vm7, %v2661_v11  ;;  %2584 = vmatprep.mubr.msk.f32.mxu1 %vm3064_vm0, %v3063_v1 }
 0x56c   : > { %2582 = vmatprep.subr.mxu1 %v3063_v1 }
 0x56d   : > { %v1363_v20 = vsub.f32 2.0, %v1362_v19 }
 0x56f   : > { %v1364_v21 = vmul.f32 %v2797_v18, %v1363_v20 }
 0x571   : > { %v1365_v22 = vmul.f32 %v2793_v5, %v1364_v21 }
 0x573   : > { %1767 = vst.msk [vmem:[%s755_s9] sm:$0xf] %vm858_vm4, %v1365_v22  ;;  %2594 = vmatmul.mubr.msk.f32.vlgmr.msra.gmra.mrb[8].mxu0 %vm1043_vm6, %v1365_v22  ;;  %2583 = vmatpush3.xpose.msk.msra.mxu1 %vm1043_vm6, %v774_v12  ;;  %s719_s9 = scalar_lea.vmem [#allocation13], %s3376_s17 }
 0x574   : > { %2671 = vmatprep.subr.bf16.mxu1 %v3062_v0  ;;  %2613 = vmatprep.mubr.msk.f32.mxu0 %vm3064_vm0, %v3063_v1 }
 0x575   : > { %2677 = vmatpush3.bf16.xpose.msk.msra.mxu0 %vm3422_vm2, %v2675_v33 }
 0x576   : > { %2678 = vmatprep.subr.bf16.mxu0 %v3062_v0 }
 0x57d   : > { %2681 = vmatpush3.bf16.xpose.msk.msra.mxu0 %vm3422_vm2, %v2679_v36 }
 0x57e   : > { %2690 = vmatprep.subr.bf16.mxu0 %v3062_v0 }
 0x63d   : > { %v1526_v23 = vpop.f32.mrb[8].mxu1 }
 0x63e   : > { %2798 = vrcp.f32 %v1526_v23  ;;  %v2577_v24 = vpop.f32.mrb[9].mxu1 }
 0x646   : > { %v1686_v25 = vpop.f32.mrb[8].mxu0 }
 0x647   : > { %v2595_v26 = vpop.f32.mrb[9].mxu0 }
 0x648   : > { %v2799_v27 = vpop.eup %2798 }
 0x649   : > { %v1531_v28 = vmul.f32 %v2799_v27, %v1526_v23 }
 0x64b   : > { %v1532_v29 = vsub.f32 2.0, %v1531_v28 }
 0x64d   : > { %v1533_v30 = vmul.f32 %v2799_v27, %v1532_v29 }
 0x64f   : > { %2585 = vmatmul.mubr.msk.f32.vlgmr.msra.gmra.mrb[10].mxu1 %vm1043_vm6, %v1533_v30 }
 0x650   : > { %2673 = vmatpush3.bf16.msra.mxu1 %v3516_v54  ;;  %2602 = vmatprep.mubr.msk.f32.mxu1 %vm3064_vm0, %v3063_v1  ;;  %v2695_v54 = vpack.c.bf16 %v767_v53, %v766_v52 }
 0x651   : > { %2600 = vmatprep.subr.mxu1 %v3063_v1 }
 0x654   : > { %2601 = vmatpush3.msra.mxu1 %v3530_v56 }
 0x655   : > { %2682 = vmatprep.subr.bf16.mxu1 %v3062_v0 }
 0x722   : > { %v1612_v39 = vpop.f32.mrb[10].mxu1 }
 0x723   : > { %v1616_v40 = vmul.f32 %v2795_v17, %v1612_v39  ;;  %v2586_v41 = vpop.f32.mrb[11].mxu1 }
 0x725   : > { %v1690_v43 = vmul.f32 %v1686_v25, %v1616_v40  ;;  %1765 = vst.msk [vmem:[%s719_s9] sm:$0xf] %vm958_vm3, %v1616_v40 }
 0x727   : > { %2603 = vmatmul.mubr.msk.f32.vlgmr.msra.gmra.mrb[12].mxu1 %vm965_vm5, %v1690_v43 }
 0x728   : > { %2685 = vmatpush3.bf16.xpose.msk.msra.mxu1 %vm3422_vm2, %v2683_v42  ;;  %2624 = vmatprep.mubr.msk.f32.mxu1 %vm3064_vm0, %v3063_v1 }
 0x729   : > { %2686 = vmatprep.subr.bf16.mxu1 %v3062_v0 }
 0x730   : > { %2689 = vmatpush3.bf16.xpose.msk.msra.mxu1 %vm3422_vm2, %v2687_v46 }
 0x737   : > { %2625 = vmatmul.mubr.msk.f32.vlgmr.msra.gmra.mrb[14].mxu1 %vm781_vm1, %v3539_v59 }
 0x7fa   : > { %v1760_v50 = vpop.f32.mrb[12].mxu1 }
 0x7fb   : > { %v2604_v51 = vpop.f32.mrb[13].mxu1  ;;  %2614 = vmatmul.mubr.msk.f32.vlgmr.msra.gmra.mrb[10].mxu0 %vm781_vm1, %v1760_v50 }
 0x7fc   : > { %2693 = vmatpush3.bf16.xpose.msk.msra.mxu0 %vm3422_vm2, %v2691_v49  ;;  %2635 = vmatprep.mubr.msk.f32.mxu0 %vm3064_vm0, %v3063_v1 }
 0x7fd   : > { %2694 = vmatprep.subr.bf16.mxu0 %v3062_v0 }
 0x804   : > { %2697 = vmatpush3.bf16.xpose.msk.msra.mxu0 %vm3422_vm2, %v2695_v54 }
 0x80a   : > { %v3636_v55 = vpop.f32.mrb[14].mxu1 }
 0x80b   : > { %v2626_v56 = vpop.f32.mrb[15].mxu1  ;;  %2636 = vmatmul.mubr.msk.f32.vlgmr.msra.gmra.mrb[12].mxu0 %vm781_vm1, %v3436_v7 }
 0x80c   : > { %2933 = shalt.err (!%p2930_p2)
}
 0x80d   : > { %s2934_s29 = scalar_lea.hbm %s3647_s26, 64  ;;  %s2938_s21 = scalar_lea.hbm %s3840_s15, 128 }
 0x80e   : > { %p2935_p13 = scmp.ne.s32.totalorder %s3647_s26, %s2934_s29  ;;  %p2939_p1 = scmp.lt.u32.totalorder %s3647_s26, %s3840_s15 }
 0x80f   : > { %p2940_p0 = scmp.lt.u32.totalorder %s2938_s21, %s2934_s29  ;;  %p2942_p9 = scmp.lt.u32.totalorder %s2934_s29, %s3647_s26 }
 0x810   : > { %p2936_p10 = pnand %p2935_p13, %p3841_p12 }
 0x811   : > { %p2941_p3 = por %p2940_p0, %p2939_p1 }
 0x812   : > { %p2937_p8 = pneg %p2936_p10 }
 0x813   : > { %p2943_p6 = por %p2942_p9, %p2941_p3 }
 0x815   : > { %p2944_p4 = pnand %p2943_p6, %p2937_p8 }
 0x817   : > { %2947 = shalt.err (!%p2944_p4)
}
 0x818   : > { %2713 = dma.vmem_to_hbm [thread:$0]  (%p3841_p12), %s2077_s30, 64, %s3647_s26, %s3653_s23  }
 0x819   : > { %s2089_s19 = sshll.u32 %s719_s9, 4  ;;  %s3842_s28 = sld [smem:[#allocation35_spill]]  ;;  %s2090_s19 = int_to_ptr.vmem [resolvable:$true] %s2089_s19 }
 0x81a   : > { %s2948_s21 = scalar_lea.vmem %s2090_s19, 64  ;;  %s3066_s29 = smov [#allocation13]  }
 0x81b   : > { %p2949_p5 = scmp.ne.s32.totalorder %s2090_s19, %s2948_s21  ;;  %s2952_s1 = sshll.u32 %s3066_s29, 4  ;;  %s2953_s1 = int_to_ptr.vmem [resolvable:$false] %s2952_s1 }
 0x81c   : > { %s2954_s18 = scalar_lea.vmem %s2953_s1, 128  ;;  %p2955_p2 = scmp.lt.s32.totalorder %s2090_s19, %s2953_s1 }
 0x81d   : > { %p2950_p7 = pnand %p2949_p5, %p3841_p12  ;;  %p2956_p13 = scmp.lt.s32.totalorder %s2954_s18, %s2948_s21 }
 0x81f   : > { %s2087_s13 = scalar_lea.hbm %s3842_s28, %s3641_s2  ;;  %p2951_p11 = pneg %p2950_p7 }
 0x820   : > { %p2957_p10 = por %p2956_p13, %p2955_p2 }
 0x822   : > { %p2958_p8 = pnand %p2957_p10, %p2951_p11 }
 0x824   : > { %2961 = shalt.err (!%p2958_p8)
}
 0x825   : > { %s2962_s9 = scalar_lea.hbm %s2087_s13, 64  ;;  %s2966_s0 = scalar_lea.hbm %s3842_s28, 128 }
 0x826   : > { %p2963_p1 = scmp.ne.s32.totalorder %s2087_s13, %s2962_s9  ;;  %p2967_p9 = scmp.lt.u32.totalorder %s2087_s13, %s3842_s28 }
 0x827   : > { %p2968_p6 = scmp.lt.u32.totalorder %s2966_s0, %s2962_s9  ;;  %p2970_p5 = scmp.lt.u32.totalorder %s2962_s9, %s2087_s13 }
 0x828   : > { %p2964_p0 = pnand %p2963_p1, %p3841_p12 }
 0x829   : > { %p2969_p4 = por %p2968_p6, %p2967_p9 }
 0x82a   : > { %p2965_p3 = pneg %p2964_p0 }
 0x82b   : > { %p2971_p7 = por %p2970_p5, %p2969_p4 }
 0x82d   : > { %p2972_p11 = pnand %p2971_p7, %p2965_p3 }
 0x82f   : > { %2975 = shalt.err (!%p2972_p11)
}
 0x830   : > { %2714 = dma.vmem_to_hbm [thread:$0]  (%p3841_p12), %s2090_s19, 64, %s2087_s13, %s3653_s23   ;;  %vm2029_vm8 = vcmask 257024  }
 0x831   : > { %s3843_s29 = sld [smem:[#allocation32_spill]]  ;;  %s705_s1 = scalar_lea.vmem [#allocation10], %s3376_s17 }
 0x832   : > { %s2063_s18 = sshll.u32 %s705_s1, 4  ;;  %s3844_s19 = sld [smem:[#allocation33_spill]]  ;;  %s3703_s18 = int_to_ptr.vmem [resolvable:$true] %s2063_s18 }
 0x833   : > { %s2032_s26 = scalar_lea.sflag [#allocation4], %s3373_s12  ;;  %s2976_s30 = scalar_lea.vmem %s3703_s18, 64 }
 0x834   : > { %p2977_p2 = scmp.ne.s32.totalorder %s3703_s18, %s2976_s30  ;;  %s3067_s17 = smov [#allocation10]  }
 0x835   : > { %s2980_s0 = sshll.u32 %s3067_s17, 4  ;;  %s2981_s0 = int_to_ptr.vmem [resolvable:$false] %s2980_s0 }
 0x836   : > { %p2978_p13 = pnand %p2977_p2, %p3841_p12  ;;  %s2982_s10 = scalar_lea.vmem %s2981_s0, 128 }
 0x837   : > { %v2437_v7 = vld [vmem:[%s3843_s29] ss:$0 sm:$0xff]  ;;  %p2983_p8 = scmp.lt.s32.totalorder %s3703_s18, %s2981_s0  ;;  %p2984_p1 = scmp.lt.s32.totalorder %s2982_s10, %s2976_s30 }
 0x838   : > { %s3701_s13 = scalar_lea.hbm %s3844_s19, %s3641_s2  ;;  %p2979_p10 = pneg %p2978_p13 }
 0x839   : > { %p2985_p0 = por %p2984_p1, %p2983_p8 }
 0x83b   : > { %p2986_p3 = pnand %p2985_p0, %p2979_p10 }
 0x8ce   : > { %v1849_v0 = vpop.f32.mrb[10].mxu0 }
 0x8cf   : > { %v1935_v1 = vadd.f32 %v3636_v55, %v1849_v0  ;;  %v2615_v4 = vpop.f32.mrb[11].mxu0 }
 0x8de   : > { %v2016_v57 = vpop.f32.mrb[12].mxu0 }
 0x8df   : > { %v2020_v58 = vadd.f32 %v2016_v57, %v1935_v1  ;;  %v2637_v59 = vpop.f32.mrb[13].mxu0 }
 0x8e1   : > { %v2027_v60 = vadd.f32 %v2437_v7, %v2020_v58 }
 0x8e3   : > { %2800 = vtanh.f32 %v2027_v60 }
 0x8ed   : > { %v2801_v61 = vpop.eup %2800 }
 0x8ee   : > { %2030 = vst.msk [vmem:[%s705_s1] sm:$0xf] %vm2029_vm8, %v2801_v61 }
 0x8ef   : > { %2989 = shalt.err (!%p2986_p3)
}
 0x8f0   : > { %s2990_s12 = scalar_lea.hbm %s3701_s13, 64  ;;  %s2994_s3 = scalar_lea.hbm %s3844_s19, 128 }
 0x8f1   : > { %p2991_p9 = scmp.ne.s32.totalorder %s3701_s13, %s2990_s12  ;;  %p2995_p5 = scmp.lt.u32.totalorder %s3701_s13, %s3844_s19 }
 0x8f2   : > { %p2996_p7 = scmp.lt.u32.totalorder %s2994_s3, %s2990_s12  ;;  %p2998_p2 = scmp.lt.u32.totalorder %s2990_s12, %s3701_s13 }
 0x8f3   : > { %p2992_p6 = pnand %p2991_p9, %p3841_p12 }
 0x8f4   : > { %p2997_p11 = por %p2996_p7, %p2995_p5 }
 0x8f5   : > { %p2993_p4 = pneg %p2992_p6 }
 0x8f6   : > { %p2999_p13 = por %p2998_p2, %p2997_p11 }
 0x8f8   : > { %p3000_p10 = pnand %p2999_p13, %p2993_p4 }
 0x8fa   : > { %3003 = shalt.err (!%p3000_p10)
}
 0x8fb   : > { %2712 = dma.vmem_to_hbm [thread:$0]  (%p3841_p12), %s3703_s18, 64, %s3701_s13, %s2032_s26  }
 0x8fc PF: > { %s3845_s9 = sld [smem:[#allocation19_spill]]  ;;  %s3846_s23 = sld [smem:[#allocation24_spill]] }
 0x8fd   : > { %p3848_p1 = scmp.ge.s32.totalorder %s3054_s27, 2 }
 0x902   : > { %s2107_s30 = sand.u32 1, %s3845_s9   ;;  %p3847_p8 = scmp.ne.s32.totalorder %s3846_s23, 0 }
 0x903   : > { %s2108_s17 = scalar_lea.sflag [#allocation4], %s2107_s30 }
 0x904   : > { %p2733_p0 = pnand %p3848_p1, %p3847_p8 }
 0x906   : > { %3033 = dma.done.wait (!%p2733_p0), %s2108_s17, 64  }
 0x907   : > { %3035 = vsyncadd (!%p2733_p0), %s2108_s17, 4294967232  ;;  %s3849_s0 = sadd.s32 4294967294, %s3054_s27  }
 0x908   : > { %s2116_s10 = sand.u32 1, %s3849_s0  }
 0x909   : > { %s2117_s12 = scalar_lea.sflag [#allocation12], %s2116_s10 }
 0x90a   : > { %3037 = dma.done.wait (!%p2733_p0), %s2117_s12, 128  }
 0x90b   : > { %3039 = vsyncadd (!%p2733_p0), %s2117_s12, 4294967168  ;;  %s3850_s27 = sld [smem:[#allocation21_spill]]  ;;  %s3851_s18 = sld [smem:[#allocation20_spill]] }
 0x90c   : > { %s3852_s26 = sld [smem:[#allocation22_spill]]  ;;  %s3853_s24 = smov %s3046_s25 }
 0x911   : > { %p38_p12 = scmp.ge.s32.totalorder %s3850_s27, 4   ;;  %s3854_s25 = smov %s3851_s18 }
 0x913   :  { %40 = sbr.rel (!%p38_p12) target bundleno = 23 (0x17), region = 213 }
 0x91a   :  { %2145 = vsyncpa [#allocation3], 1 }
 0x91b   :  { %2147 = vsyncpa [#allocation3 + $0x1], 1 }
 0x91c   :  { %2148 = vsyncpa [#allocation6], 1 }
 0x91d   :  { %2150 = vsyncpa [#allocation6 + $0x1], 1 }
 0x91e   :  { %2151 = vsyncpa [#allocation9], 1 }
 0x91f   :  { %2152 = vsyncpa [#allocation4], 1 }
 0x920   :  { %2154 = vsyncpa [#allocation4 + $0x1], 1 }
 0x921   :  { %2155 = vsyncpa [#allocation12], 1 }
 0x922   :  { %2157 = vsyncpa [#allocation12 + $0x1], 1 }

</bundles_post_ra>
